<compile_context>
chip_gen: v6e
topology: v6e:2x2x1
jax: 0.10.0
libtpu: 0.0.40
codegen_flags: <defaults>
</compile_context>

<pallas_src>
import jax
import jax.numpy as jnp
from jax.experimental import pallas as pl
from jax.experimental.pallas import tpu as pltpu

K = 7                 # conv kernel size
C_OUT = 50            # conv out channels
FEAT = 2 * C_OUT      # 100
HID = 800
KPAD = 64             # 49 -> 64 contraction pad for the conv matmul
CPAD = 64             # 50 -> 64 conv-channel pad
FEAT_PAD = 2 * CPAD   # 128 (max feats || min feats, each padded to 64)
HID_PAD = 896         # 800 -> 896 = 7*128
OUT_PAD = 128         # fc3 output padded to a full lane group


def cnniqa_kernel(p_ref, wc_ref, bc_ref, w1_ref, b1_ref,
                  w2_ref, b2_ref, w3_ref, b3_ref, out_ref):
    # p_ref : (nb * p_pad, KPAD)  bf16  im2col patches for this batch tile
    # wc    : (KPAD, CPAD) bf16, bc: (1, CPAD) f32
    # w1    : (FEAT_PAD, HID_PAD) bf16, b1: (1, HID_PAD) f32
    # w2    : (HID_PAD, HID_PAD)  bf16, b2: (1, HID_PAD) f32
    # w3    : (HID_PAD, OUT_PAD)  bf16, b3: (1, OUT_PAD) f32
    # out   : (nb, OUT_PAD) f32  (column 0 holds q)
    nb = out_ref.shape[0]
    rows, _ = p_ref.shape
    p_pad = rows // nb
    cpad = wc_ref.shape[1]

    # 7x7 conv == one stacked MXU matmul over all (sample, output-pixel) rows.
    conv = jnp.dot(p_ref[...], wc_ref[...],
                   preferred_element_type=jnp.float32) + bc_ref[...]   # (rows, 64) f32
    conv = conv.reshape(nb, p_pad, cpad)                               # aligned split

    x1 = jnp.max(conv, axis=1)        # global max-pool            (nb, 64)
    x2 = jnp.min(conv, axis=1)        # -maxpool(-x) == global min (nb, 64)
    h = jnp.concatenate([x1, x2], axis=1).astype(w1_ref.dtype)         # (nb, 128)

    # fc1 + ReLU
    h = jnp.dot(h, w1_ref[...], preferred_element_type=jnp.float32) + b1_ref[...]
    h = jnp.maximum(h, 0.0)
    # TODO(synk): F.dropout(p=0.5) is stochastic train-time only; identity here (eval semantics).
    h = h.astype(w2_ref.dtype)
    # fc2 + ReLU
    h = jnp.dot(h, w2_ref[...], preferred_element_type=jnp.float32) + b2_ref[...]
    h = jnp.maximum(h, 0.0).astype(w3_ref.dtype)
    # fc3 (output padded to 128 lanes; only column 0 is real)
    q = jnp.dot(h, w3_ref[...], preferred_element_type=jnp.float32) + b3_ref[...]
    out_ref[...] = q.astype(out_ref.dtype)


def _im2col(x, dtype):
    """x: (N,1,H,W) f32 -> lane-dense patches (N, P_pad, KPAD), P_pad % 16 == 0."""
    N, _, H, W = x.shape
    Ho, Wo = H - K + 1, W - K + 1
    P = Ho * Wo
    cols = [x[:, 0, kh:kh + Ho, kw:kw + Wo]
            for kh in range(K) for kw in range(K)]
    p = jnp.stack(cols, axis=-1).reshape(N, P, K * K)          # (N, P, 49)
    p = jnp.pad(p, ((0, 0), (0, 0), (0, KPAD - K * K)))        # 49 -> 64 (zeros)
    p_pad = ((P + 15) // 16) * 16                              # sublane-align rows
    if p_pad != P:
        # Replicate a real patch so the max/min pools are unchanged.
        rep = jnp.broadcast_to(p[:, :1, :], (N, p_pad - P, KPAD))
        p = jnp.concatenate([p, rep], axis=1)
    return p.astype(dtype), p_pad


def cnniqa_forward(x, packed_params, batch_tile=128):
    """x: (..., 1, H, W) -> (N, 1) f32, matching CNNIQAnet.forward (eval mode)."""
    x = x.reshape(-1, x.shape[-3], x.shape[-2], x.shape[-1]).astype(jnp.float32)
    N = x.shape[0]
    wc, bc, w1, b1, w2, b2, w3, b3 = packed_params

    patches, p_pad = _im2col(x, wc.dtype)                      # (N, P_pad, KPAD)

    if N <= batch_tile:
        nb = N                                                 # single tile
    else:
        assert batch_tile % 8 == 0
        nb = batch_tile
    n_pad = pl.cdiv(N, nb) * nb
    if n_pad != N:
        patches = jnp.pad(patches, ((0, n_pad - N), (0, 0), (0, 0)))
    patches = patches.reshape(n_pad * p_pad, KPAD)             # flat lane-dense matrix
    grid = (n_pad // nb,)

    def _resident(a):  # weights/biases: same block every step -> stay VMEM-resident
        return pl.BlockSpec(a.shape, lambda i: (0, 0))

    out = pl.pallas_call(
        cnniqa_kernel,
        out_shape=jax.ShapeDtypeStruct((n_pad, OUT_PAD), jnp.float32),
        grid_spec=pltpu.PrefetchScalarGridSpec(
            num_scalar_prefetch=0,
            grid=grid,
            in_specs=[pl.BlockSpec((nb * p_pad, KPAD), lambda i: (i, 0))]
                     + [_resident(a) for a in (wc, bc, w1, b1, w2, b2, w3, b3)],
            out_specs=pl.BlockSpec((nb, OUT_PAD), lambda i: (i, 0)),
        ),
        compiler_params=pltpu.CompilerParams(
            dimension_semantics=("parallel",),
            vmem_limit_bytes=32 << 20,
        ),
    )(patches, wc, bc, w1, b1, w2, b2, w3, b3)
    return out[:N, :1]


def init_params(key):
    """Raw parameters in PyTorch layout (Conv2d / Linear weight conventions)."""
    ks = jax.random.split(key, 8)
    s = 0.05
    w_conv = jax.random.normal(ks[0], (C_OUT, 1, K, K), jnp.float32) * s
    b_conv = jax.random.normal(ks[1], (C_OUT,), jnp.float32) * s
    w1 = jax.random.normal(ks[2], (HID, FEAT), jnp.float32) * s
    b1 = jax.random.normal(ks[3], (HID,), jnp.float32) * s
    w2 = jax.random.normal(ks[4], (HID, HID), jnp.float32) * s
    b2 = jax.random.normal(ks[5], (HID,), jnp.float32) * s
    w3 = jax.random.normal(ks[6], (1, HID), jnp.float32) * s
    b3 = jax.random.normal(ks[7], (1,), jnp.float32) * s
    return (w_conv, b_conv, w1, b1, w2, b2, w3, b3)


def pack_params(params, dtype=jnp.bfloat16):
    """Pad + transpose PyTorch-layout params into the kernel's MXU-friendly layout."""
    w_conv, b_conv, w1, b1, w2, b2, w3, b3 = params
    # conv -> im2col matrix (kh*7+kw, out_ch), zero-padded to (KPAD, CPAD)
    wc = w_conv.reshape(C_OUT, K * K).T                                   # (49, 50)
    wc_p = jnp.zeros((KPAD, CPAD), jnp.float32).at[:K * K, :C_OUT].set(wc)
    bc_p = jnp.zeros((1, CPAD), jnp.float32).at[0, :C_OUT].set(b_conv)
    # fc1: rows 0..49 act on max-pool features, rows 64..113 on min-pool features
    w1t = w1.T                                                            # (100, 800)
    w1_p = jnp.zeros((FEAT_PAD, HID_PAD), jnp.float32)
    w1_p = w1_p.at[:C_OUT, :HID].set(w1t[:C_OUT])
    w1_p = w1_p.at[CPAD:CPAD + C_OUT, :HID].set(w1t[C_OUT:])
    b1_p = jnp.zeros((1, HID_PAD), jnp.float32).at[0, :HID].set(b1)
    w2_p = jnp.zeros((HID_PAD, HID_PAD), jnp.float32).at[:HID, :HID].set(w2.T)
    b2_p = jnp.zeros((1, HID_PAD), jnp.float32).at[0, :HID].set(b2)
    w3_p = jnp.zeros((HID_PAD, OUT_PAD), jnp.float32).at[:HID, 0].set(w3[0])
    b3_p = jnp.zeros((1, OUT_PAD), jnp.float32).at[0, 0].set(b3[0])
    return (wc_p.astype(dtype), bc_p,
            w1_p.astype(dtype), b1_p,
            w2_p.astype(dtype), b2_p,
            w3_p.astype(dtype), b3_p)


if __name__ == "__main__":
    key = jax.random.PRNGKey(0)
    k_x, k_p = jax.random.split(key)
    # Small input consistent with the module: batch=2, 1 channel, 16x16 patch.
    x = jax.random.normal(k_x, (2, 1, 16, 16), jnp.float32)
    packed = pack_params(init_params(k_p))

    fwd = jax.jit(lambda xx: cnniqa_forward(xx, packed))
    q = jax.block_until_ready(fwd(x))
    assert q.shape == (2, 1) and q.dtype == jnp.float32
    assert bool(jnp.all(jnp.isfinite(q)))
    print("KERNEL_OK")
</pallas_src>

<mosaic_0001>
module attributes {stable_mosaic.version = 11 : i64} {
  func.func @cnniqa_kernel(%arg0: i32, %arg1: memref<224x64xbf16, #tpu.memory_space<vmem>>, %arg2: memref<64x64xbf16, #tpu.memory_space<vmem>>, %arg3: memref<1x64xf32, #tpu.memory_space<vmem>>, %arg4: memref<128x896xbf16, #tpu.memory_space<vmem>>, %arg5: memref<1x896xf32, #tpu.memory_space<vmem>>, %arg6: memref<896x896xbf16, #tpu.memory_space<vmem>>, %arg7: memref<1x896xf32, #tpu.memory_space<vmem>>, %arg8: memref<896x128xbf16, #tpu.memory_space<vmem>>, %arg9: memref<1x128xf32, #tpu.memory_space<vmem>>, %arg10: memref<2x128xf32, #tpu.memory_space<vmem>>) attributes {dimension_semantics = [#tpu.dimension_semantics<parallel>], iteration_bounds = array<i64: 1>, scalar_prefetch = 0 : i64, scratch_operands = 0 : i64, tpu.core_type = #tpu.core_type<tc>, window_params = [{transform_indices = @transform_0, window_bounds = array<i64: 224, 64>}, {pipeline_mode = #tpu.pipeline_mode<synchronous>, transform_indices = @transform_1, window_bounds = array<i64: 64, 64>}, {pipeline_mode = #tpu.pipeline_mode<synchronous>, transform_indices = @transform_2, window_bounds = array<i64: 1, 64>}, {pipeline_mode = #tpu.pipeline_mode<synchronous>, transform_indices = @transform_3, window_bounds = array<i64: 128, 896>}, {pipeline_mode = #tpu.pipeline_mode<synchronous>, transform_indices = @transform_4, window_bounds = array<i64: 1, 896>}, {pipeline_mode = #tpu.pipeline_mode<synchronous>, transform_indices = @transform_5, window_bounds = array<i64: 896, 896>}, {pipeline_mode = #tpu.pipeline_mode<synchronous>, transform_indices = @transform_6, window_bounds = array<i64: 1, 896>}, {pipeline_mode = #tpu.pipeline_mode<synchronous>, transform_indices = @transform_7, window_bounds = array<i64: 896, 128>}, {pipeline_mode = #tpu.pipeline_mode<synchronous>, transform_indices = @transform_8, window_bounds = array<i64: 1, 128>}, {transform_indices = @transform_9, window_bounds = array<i64: 2, 128>}]} {
    %c0 = arith.constant 0 : index
    %c0_0 = arith.constant 0 : index
    %0 = vector.load %arg1[%c0, %c0_0] : memref<224x64xbf16, #tpu.memory_space<vmem>>, vector<224x64xbf16>
    %c0_1 = arith.constant 0 : index
    %c0_2 = arith.constant 0 : index
    %1 = vector.load %arg2[%c0_1, %c0_2] : memref<64x64xbf16, #tpu.memory_space<vmem>>, vector<64x64xbf16>
    %cst = arith.constant dense<0.000000e+00> : vector<224x64xf32>
    %2 = tpu.matmul %0, %1, %cst {dimension_numbers = #tpu.dot_dimension_numbers<[1], [0], [0], [1], [0, 0, 1, 1], [], []>} : vector<224x64xbf16>, vector<64x64xbf16>, vector<224x64xf32> -> vector<224x64xf32>
    %c0_3 = arith.constant 0 : index
    %c0_4 = arith.constant 0 : index
    %3 = vector.load %arg3[%c0_3, %c0_4] : memref<1x64xf32, #tpu.memory_space<vmem>>, vector<1x64xf32>
    %4 = vector.broadcast %3 : vector<1x64xf32> to vector<224x64xf32>
    %5 = arith.addf %2, %4 : vector<224x64xf32>
    %6 = vector.shape_cast %5 : vector<224x64xf32> to vector<2x112x64xf32>
    %cst_5 = arith.constant dense<0xFF800000> : vector<2x64xf32>
    %7 = vector.multi_reduction <maximumf>, %6, %cst_5 [1] : vector<2x112x64xf32> to vector<2x64xf32>
    %cst_6 = arith.constant dense<0x7F800000> : vector<2x64xf32>
    %8 = vector.multi_reduction <minimumf>, %6, %cst_6 [1] : vector<2x112x64xf32> to vector<2x64xf32>
    %9 = tpu.concatenate %7, %8 in 1 : vector<2x64xf32>, vector<2x64xf32> -> vector<2x128xf32>
    %10 = arith.truncf %9 : vector<2x128xf32> to vector<2x128xbf16>
    %c0_7 = arith.constant 0 : index
    %c0_8 = arith.constant 0 : index
    %11 = vector.load %arg4[%c0_7, %c0_8] : memref<128x896xbf16, #tpu.memory_space<vmem>>, vector<128x896xbf16>
    %cst_9 = arith.constant dense<0.000000e+00> : vector<2x896xf32>
    %12 = tpu.matmul %10, %11, %cst_9 {dimension_numbers = #tpu.dot_dimension_numbers<[1], [0], [0], [1], [0, 0, 1, 1], [], []>} : vector<2x128xbf16>, vector<128x896xbf16>, vector<2x896xf32> -> vector<2x896xf32>
    %c0_10 = arith.constant 0 : index
    %c0_11 = arith.constant 0 : index
    %13 = vector.load %arg5[%c0_10, %c0_11] : memref<1x896xf32, #tpu.memory_space<vmem>>, vector<1x896xf32>
    %14 = vector.broadcast %13 : vector<1x896xf32> to vector<2x896xf32>
    %15 = arith.addf %12, %14 : vector<2x896xf32>
    %cst_12 = arith.constant 0.000000e+00 : f32
    %16 = vector.broadcast %cst_12 : f32 to vector<2x896xf32>
    %17 = arith.maximumf %15, %16 : vector<2x896xf32>
    %18 = arith.truncf %17 : vector<2x896xf32> to vector<2x896xbf16>
    %c0_13 = arith.constant 0 : index
    %c0_14 = arith.constant 0 : index
    %19 = vector.load %arg6[%c0_13, %c0_14] : memref<896x896xbf16, #tpu.memory_space<vmem>>, vector<896x896xbf16>
    %cst_15 = arith.constant dense<0.000000e+00> : vector<2x896xf32>
    %20 = tpu.matmul %18, %19, %cst_15 {dimension_numbers = #tpu.dot_dimension_numbers<[1], [0], [0], [1], [0, 0, 1, 1], [], []>} : vector<2x896xbf16>, vector<896x896xbf16>, vector<2x896xf32> -> vector<2x896xf32>
    %c0_16 = arith.constant 0 : index
    %c0_17 = arith.constant 0 : index
    %21 = vector.load %arg7[%c0_16, %c0_17] : memref<1x896xf32, #tpu.memory_space<vmem>>, vector<1x896xf32>
    %22 = vector.broadcast %21 : vector<1x896xf32> to vector<2x896xf32>
    %23 = arith.addf %20, %22 : vector<2x896xf32>
    %cst_18 = arith.constant 0.000000e+00 : f32
    %24 = vector.broadcast %cst_18 : f32 to vector<2x896xf32>
    %25 = arith.maximumf %23, %24 : vector<2x896xf32>
    %26 = arith.truncf %25 : vector<2x896xf32> to vector<2x896xbf16>
    %c0_19 = arith.constant 0 : index
    %c0_20 = arith.constant 0 : index
    %27 = vector.load %arg8[%c0_19, %c0_20] : memref<896x128xbf16, #tpu.memory_space<vmem>>, vector<896x128xbf16>
    %cst_21 = arith.constant dense<0.000000e+00> : vector<2x128xf32>
    %28 = tpu.matmul %26, %27, %cst_21 {dimension_numbers = #tpu.dot_dimension_numbers<[1], [0], [0], [1], [0, 0, 1, 1], [], []>} : vector<2x896xbf16>, vector<896x128xbf16>, vector<2x128xf32> -> vector<2x128xf32>
    %c0_22 = arith.constant 0 : index
    %c0_23 = arith.constant 0 : index
    %29 = vector.load %arg9[%c0_22, %c0_23] : memref<1x128xf32, #tpu.memory_space<vmem>>, vector<1x128xf32>
    %30 = vector.broadcast %29 : vector<1x128xf32> to vector<2x128xf32>
    %31 = arith.addf %28, %30 : vector<2x128xf32>
    %c0_24 = arith.constant 0 : index
    %c0_25 = arith.constant 0 : index
    %32 = vector.load %arg10[%c0_24, %c0_25] : memref<2x128xf32, #tpu.memory_space<vmem>>, vector<2x128xf32>
    tpu.vector_store %arg10[%c0_24, %c0_25], %31 {strides = array<i32>} : memref<2x128xf32, #tpu.memory_space<vmem>>, vector<2x128xf32>,
    return
  }
  func.func @transform_0(%arg0: i32) -> (i32, i32) {
    %c0_i32 = arith.constant 0 : i32
    %c0_i32_0 = arith.constant 0 : i32
    return %arg0, %c0_i32 : i32, i32
  }
  func.func @transform_1(%arg0: i32) -> (i32, i32) {
    %c0_i32 = arith.constant 0 : i32
    %c0_i32_0 = arith.constant 0 : i32
    %c0_i32_1 = arith.constant 0 : i32
    return %c0_i32, %c0_i32_0 : i32, i32
  }
  func.func @transform_2(%arg0: i32) -> (i32, i32) {
    %c0_i32 = arith.constant 0 : i32
    %c0_i32_0 = arith.constant 0 : i32
    %c0_i32_1 = arith.constant 0 : i32
    return %c0_i32, %c0_i32_0 : i32, i32
  }
  func.func @transform_3(%arg0: i32) -> (i32, i32) {
    %c0_i32 = arith.constant 0 : i32
    %c0_i32_0 = arith.constant 0 : i32
    %c0_i32_1 = arith.constant 0 : i32
    return %c0_i32, %c0_i32_0 : i32, i32
  }
  func.func @transform_4(%arg0: i32) -> (i32, i32) {
    %c0_i32 = arith.constant 0 : i32
    %c0_i32_0 = arith.constant 0 : i32
    %c0_i32_1 = arith.constant 0 : i32
    return %c0_i32, %c0_i32_0 : i32, i32
  }
  func.func @transform_5(%arg0: i32) -> (i32, i32) {
    %c0_i32 = arith.constant 0 : i32
    %c0_i32_0 = arith.constant 0 : i32
    %c0_i32_1 = arith.constant 0 : i32
    return %c0_i32, %c0_i32_0 : i32, i32
  }
  func.func @transform_6(%arg0: i32) -> (i32, i32) {
    %c0_i32 = arith.constant 0 : i32
    %c0_i32_0 = arith.constant 0 : i32
    %c0_i32_1 = arith.constant 0 : i32
    return %c0_i32, %c0_i32_0 : i32, i32
  }
  func.func @transform_7(%arg0: i32) -> (i32, i32) {
    %c0_i32 = arith.constant 0 : i32
    %c0_i32_0 = arith.constant 0 : i32
    %c0_i32_1 = arith.constant 0 : i32
    return %c0_i32, %c0_i32_0 : i32, i32
  }
  func.func @transform_8(%arg0: i32) -> (i32, i32) {
    %c0_i32 = arith.constant 0 : i32
    %c0_i32_0 = arith.constant 0 : i32
    %c0_i32_1 = arith.constant 0 : i32
    return %c0_i32, %c0_i32_0 : i32, i32
  }
  func.func @transform_9(%arg0: i32) -> (i32, i32) {
    %c0_i32 = arith.constant 0 : i32
    %c0_i32_0 = arith.constant 0 : i32
    return %arg0, %c0_i32 : i32, i32
  }
}

</mosaic_0001>

<bundles_post_ra>
// kernel: _lambda_.1
= control target key start
LH: loop header
LB: loop body
LE: loop exit
PB: predicated region body
PF: predicated region fallthrough
CT: control target
= control target key end

     0   :  { %14 = vsyncpa [#allocation3], 0  ;;  %s8064_s0 = inlined_call_operand.vmem [shape: bf16[224,64], index: 0, kind: input, shape index: {}]   ;;  %s8065_s1 = inlined_call_operand.vmem [shape: bf16[64,64], index: 1, kind: input, shape index: {}]   ;;  %s8066_s2 = inlined_call_operand.vmem [shape: f32[1,64], index: 2, kind: input, shape index: {}]   ;;  %s8067_s3 = inlined_call_operand.hbm [shape: bf16[128,896], index: 3, kind: input, shape index: {}]   ;;  %s8068_s4 = inlined_call_operand.vmem [shape: f32[1,896], index: 4, kind: input, shape index: {}]   ;;  %s8069_s5 = inlined_call_operand.vmem [shape: bf16[896,896], index: 5, kind: input, shape index: {}]   ;;  %s8070_s6 = inlined_call_operand.vmem [shape: f32[1,896], index: 6, kind: input, shape index: {}]   ;;  %s8071_s7 = inlined_call_operand.hbm [shape: bf16[896,128], index: 7, kind: input, shape index: {}]   ;;  %s8072_s8 = inlined_call_operand.vmem [shape: f32[1,128], index: 8, kind: input, shape index: {}]   ;;  %s8073_s9 = inlined_call_operand.vmem [shape: f32[2,128], index: 9, kind: output, shape index: {}]  }
   0x1   :  { %15 = vsyncpa [#allocation5], 0  ;;  %s6464_s30 = smov [#allocation2]  }
   0x2   :  { %s27_s10 = sshll.u32 %s6464_s30, 4  ;;  %s28_s10 = int_to_ptr.vmem [resolvable:$true] %s27_s10 }
   0x3   :  { %s6428_s11 = scalar_lea.vmem %s28_s10, 7168  ;;  %p6433_p1 = scmp.lt.s32.totalorder %s28_s10, %s28_s10 }
   0x4   :  { %p6429_p0 = scmp.ne.s32.totalorder %s28_s10, %s6428_s11  ;;  %p6434_p2 = scmp.lt.s32.totalorder %s6428_s11, %s6428_s11 }
   0x6   :  { %p6435_p3 = por %p6434_p2, %p6433_p1 }
   0x8   :  { %p6436_p4 = pnand %p6435_p3, %p6429_p0 }
   0xa   :  { %6439 = shalt.err (!%p6436_p4)
}
   0xb   :  { %s6465_s12 = smov 448   ;;  %s6466_s13 = smov 28  }
   0xc   :  { %33 = dma.hbm_to_vmem [thread:$0]  %s8067_s3, 7168, %s28_s10, [#allocation3], %s6465_s12, %s6465_s12, %s6466_s13  }
   0xd   :  { %s6467_s16 = smov [#allocation4]  }
   0xe   :  { %s45_s17 = sshll.u32 %s6467_s16, 4  ;;  %s46_s17 = int_to_ptr.vmem [resolvable:$true] %s45_s17 }
   0xf   :  { %s6448_s18 = scalar_lea.vmem %s46_s17, 7168  ;;  %p6453_p6 = scmp.lt.s32.totalorder %s46_s17, %s46_s17 }
  0x10   :  { %p6449_p5 = scmp.ne.s32.totalorder %s46_s17, %s6448_s18  ;;  %p6454_p7 = scmp.lt.s32.totalorder %s6448_s18, %s6448_s18 }
  0x12   :  { %p6455_p8 = por %p6454_p7, %p6453_p6 }
  0x14   :  { %p6456_p9 = pnand %p6455_p8, %p6449_p5 }
  0x16   :  { %6459 = shalt.err (!%p6456_p9)
}
  0x17   :  { %s6468_s19 = smov 64   ;;  %s6469_s20 = smov 4  }
  0x18   :  { %51 = dma.hbm_to_vmem [thread:$0]  %s8071_s7, 7168, %s46_s17, [#allocation5], %s6468_s19, %s6468_s19, %s6469_s20  }
  0x19   :  { %6460 = dma.done.wait [#allocation3], 7168  }
  0x1a   :  { %6461 = vsyncadd [#allocation3], 4294960128 }
  0x1b   :  { %6462 = dma.done.wait [#allocation5], 7168  }
  0x1c   :  { %6463 = vsyncadd [#allocation5], 4294960128  ;;  %v5706_v0 = vld [vmem:[%s8065_s1 + $0x18] sm:$0xff]   ;;  %v5707_v1 = vld [vmem:[%s8065_s1 + $0x10] sm:$0xff]   ;;  %vm198_vm0 = vcmask 523264   ;;  %vm520_vm1 = vcmask 1041409  }
  0x1d   :  { %5601 = vmatprep.subr.bf16.mxu0 %v5706_v0  ;;  %v5708_v2 = vld [vmem:[%s8065_s1 + $0x8] sm:$0xff]   ;;  %v5710_v3 = vld [vmem:[%s8064_s0] sm:$0xff]   ;;  %v5712_v6 = vld [vmem:[%s8064_s0 + $0x10] sm:$0xff]   ;;  %vm6472_vm2 = vmmov 0  }
  0x1e   :  { %5602 = vmatpush3.bf16.msra.mxu0 %v5706_v0  ;;  %5609 = vmatprep.mubr.msk.bf16.mxu0 %vm198_vm0, %v5710_v3  ;;  %v5709_v4 = vld [vmem:[%s8065_s1] sm:$0xff]   ;;  %v5711_v5 = vld [vmem:[%s8064_s0 + $0x8] sm:$0xff]   ;;  %v5713_v7 = vld [vmem:[%s8064_s0 + $0x18] sm:$0xff]  }
  0x1f   :  { %5603 = vmatprep.subr.bf16.mxu0 %v5707_v1  ;;  %v5714_v8 = vld [vmem:[%s8064_s0 + $0x20] sm:$0xff]   ;;  %v5715_v9 = vld [vmem:[%s8064_s0 + $0x28] sm:$0xff]   ;;  %v5716_v10 = vld [vmem:[%s8064_s0 + $0x30] sm:$0xff]  }
  0x20   :  { %v5717_v11 = vld [vmem:[%s8064_s0 + $0x38] sm:$0xff]   ;;  %v5718_v12 = vld [vmem:[%s8064_s0 + $0x40] sm:$0xff]   ;;  %v5719_v13 = vld [vmem:[%s8064_s0 + $0x48] sm:$0xff]  }
  0x21   :  { %v5720_v14 = vld [vmem:[%s8064_s0 + $0x50] sm:$0xff]   ;;  %v5721_v15 = vld [vmem:[%s8064_s0 + $0x58] sm:$0xff]   ;;  %v5722_v16 = vld [vmem:[%s8064_s0 + $0x60] sm:$0xff]  }
  0x22   :  { %5604 = vmatpush3.bf16.msra.mxu0 %v5707_v1  ;;  %v5723_v17 = vld [vmem:[%s8064_s0 + $0x68] sm:$0xff]   ;;  %v5727_v20 = vld [vmem:[#allocation2 + $0x198] ss:$28 sps:$4 sm:$0xff]   ;;  %v5735_v23 = vld [vmem:[#allocation2 + $0x164] ss:$28 sps:$4 sm:$0xff]  }
  0x23   :  { %5605 = vmatprep.subr.bf16.mxu0 %v5708_v2  ;;  %v5724_v18 = vld [vmem:[#allocation2 + $0x18c] ss:$28 sps:$4 sm:$0xff]   ;;  %v5729_v21 = vld [vmem:[#allocation2 + $0x19c] ss:$28 sps:$4 sm:$0xff]   ;;  %v5730_v22 = vld [vmem:[#allocation2 + $0x154] ss:$28 sps:$4 sm:$0xff]  }
  0x24   :  { %v5726_v19 = vld [vmem:[#allocation2 + $0x188] ss:$28 sps:$4 sm:$0xff]   ;;  %920 = vmatprep.subr.bf16.mxu1 %v5724_v18  ;;  %v5732_v24 = vld [vmem:[#allocation2 + $0x150] ss:$28 sps:$4 sm:$0xff]   ;;  %v5733_v25 = vld [vmem:[#allocation2 + $0x160] ss:$28 sps:$4 sm:$0xff]  }
  0x25   :  { %921 = vmatpush1.bf16.msra.mxu1 %v5726_v19  ;;  %v5736_v26 = vld [vmem:[#allocation2 + $0x11c] ss:$28 sps:$4 sm:$0xff]   ;;  %v5741_v27 = vld [vmem:[#allocation2 + $0x12c] ss:$28 sps:$4 sm:$0xff]   ;;  %v5742_v30 = vld [vmem:[#allocation2 + $0xe4] ss:$28 sps:$4 sm:$0xff]  }
  0x26   :  { %5606 = vmatpush3.bf16.msra.mxu0 %v5708_v2  ;;  %922 = vmatprep.subr.bf16.mxu1 %v5730_v22  ;;  %v5738_v28 = vld [vmem:[#allocation2 + $0x118] ss:$28 sps:$4 sm:$0xff]   ;;  %v5739_v29 = vld [vmem:[#allocation2 + $0x128] ss:$28 sps:$4 sm:$0xff]   ;;  %v5744_v31 = vld [vmem:[#allocation2 + $0xe0] ss:$28 sps:$4 sm:$0xff]  }
  0x27   :  { %5607 = vmatprep.subr.bf16.mxu0 %v5709_v4  ;;  %v5747_v32 = vld [vmem:[#allocation2 + $0xf4] ss:$28 sps:$4 sm:$0xff]   ;;  %v5748_v34 = vld [vmem:[#allocation2 + $0xac] ss:$28 sps:$4 sm:$0xff]   ;;  %v5753_v35 = vld [vmem:[#allocation2 + $0xbc] ss:$28 sps:$4 sm:$0xff]  }
  0x28   :  { %v5745_v33 = vld [vmem:[#allocation2 + $0xf0] ss:$28 sps:$4 sm:$0xff]   ;;  %v5750_v36 = vld [vmem:[#allocation2 + $0xa8] ss:$28 sps:$4 sm:$0xff]   ;;  %v5751_v37 = vld [vmem:[#allocation2 + $0xb8] ss:$28 sps:$4 sm:$0xff]  }
  0x29   :  { %923 = vmatpush1.bf16.msra.mxu1 %v5732_v24  ;;  %v5754_v38 = vld [vmem:[#allocation2 + $0x74] ss:$28 sps:$4 sm:$0xff]   ;;  %v5759_v39 = vld [vmem:[#allocation2 + $0x84] ss:$28 sps:$4 sm:$0xff]   ;;  %v5760_v42 = vld [vmem:[#allocation2 + $0x3c] ss:$28 sps:$4 sm:$0xff]  }
  0x2a   :  { %5608 = vmatpush3.bf16.msra.mxu0 %v5709_v4  ;;  %924 = vmatprep.subr.bf16.mxu1 %v5736_v26  ;;  %v5756_v40 = vld [vmem:[#allocation2 + $0x70] ss:$28 sps:$4 sm:$0xff]   ;;  %v5757_v41 = vld [vmem:[#allocation2 + $0x80] ss:$28 sps:$4 sm:$0xff]   ;;  %v5762_v44 = vld [vmem:[#allocation2 + $0x38] ss:$28 sps:$4 sm:$0xff]  }
  0x2b   :  { %1002 = vmatprep.subr.bf16.mxu0 %v5729_v21  ;;  %v5765_v43 = vld [vmem:[#allocation2 + $0x4c] ss:$28 sps:$4 sm:$0xff]   ;;  %v5766_v46 = vld [vmem:[#allocation2 + $0x4] ss:$28 sps:$4 sm:$0xff]  }
  0x2c   :  { %v5763_v45 = vld [vmem:[#allocation2 + $0x48] ss:$28 sps:$4 sm:$0xff]   ;;  %v6602_v47 = vld [vmem:[%s8066_s2] ss:$0 sm:$0xff] }
  0x2d   :  { %5610 = vmatmul.mubr.msk.bf16.vlgmr.msra.gmra.mxu0 %vm198_vm0, %v5711_v5  ;;  %925 = vmatpush1.bf16.msra.mxu1 %v5738_v28 }
  0x2e   :  { %5613 = vmatprep.mubr.msk.bf16.mxu0 %vm198_vm0, %v5712_v6  ;;  %1003 = vmatpush1.bf16.msra.mxu0 %v5727_v20 }
  0x2f   :  { %1004 = vmatprep.subr.bf16.mxu0 %v5735_v23  ;;  %926 = vmatprep.subr.bf16.mxu1 %v5742_v30 }
  0x31   :  { %927 = vmatpush1.bf16.msra.mxu1 %v5744_v31 }
  0x32   :  { %1005 = vmatpush1.bf16.msra.mxu0 %v5733_v25  ;;  %928 = vmatprep.subr.bf16.mxu1 %v5748_v34 }
  0x33   :  { %1006 = vmatprep.subr.bf16.mxu0 %v5741_v27 }
  0x35   :  { %5614 = vmatmul.mubr.msk.bf16.gmra.mxu0 %vm198_vm0, %v5713_v7  ;;  %929 = vmatpush1.bf16.msra.mxu1 %v5750_v36 }
  0x36   :  { %5617 = vmatprep.mubr.msk.bf16.mxu0 %vm198_vm0, %v5714_v8  ;;  %1007 = vmatpush1.bf16.msra.mxu0 %v5739_v29 }
  0x37   :  { %1008 = vmatprep.subr.bf16.mxu0 %v5747_v32  ;;  %930 = vmatprep.subr.bf16.mxu1 %v5754_v38 }
  0x39   :  { %931 = vmatpush1.bf16.msra.mxu1 %v5756_v40 }
  0x3a   :  { %1009 = vmatpush1.bf16.msra.mxu0 %v5745_v33  ;;  %932 = vmatprep.subr.bf16.mxu1 %v5760_v42 }
  0x3b   :  { %1010 = vmatprep.subr.bf16.mxu0 %v5753_v35 }
  0x3d   :  { %5618 = vmatmul.mubr.msk.bf16.gmra.mxu0 %vm198_vm0, %v5715_v9  ;;  %933 = vmatpush1.bf16.msra.mxu1 %v5762_v44 }
  0x3e   :  { %5621 = vmatprep.mubr.msk.bf16.mxu0 %vm198_vm0, %v5716_v10  ;;  %1011 = vmatpush1.bf16.msra.mxu0 %v5751_v37 }
  0x3f   :  { %1012 = vmatprep.subr.bf16.mxu0 %v5759_v39  ;;  %934 = vmatprep.subr.bf16.mxu1 %v5766_v46 }
  0x42   :  { %1013 = vmatpush1.bf16.msra.mxu0 %v5757_v41 }
  0x43   :  { %1014 = vmatprep.subr.bf16.mxu0 %v5765_v43 }
  0x45   :  { %5622 = vmatmul.mubr.msk.bf16.gmra.mxu0 %vm198_vm0, %v5717_v11 }
  0x46   :  { %5625 = vmatprep.mubr.msk.bf16.mxu0 %vm198_vm0, %v5718_v12  ;;  %1015 = vmatpush1.bf16.msra.mxu0 %v5763_v45 }
  0x4d   :  { %5626 = vmatmul.mubr.msk.bf16.gmra.mxu0 %vm198_vm0, %v5719_v13 }
  0x4e   :  { %5629 = vmatprep.mubr.msk.bf16.mxu0 %vm198_vm0, %v5720_v14 }
  0x55   :  { %5630 = vmatmul.mubr.msk.bf16.gmra.mxu0 %vm198_vm0, %v5721_v15 }
  0x56   :  { %5633 = vmatprep.mubr.msk.bf16.mxu0 %vm198_vm0, %v5722_v16 }
  0x5d   :  { %5634 = vmatmul.mubr.msk.bf16.gmra.mxu0 %vm198_vm0, %v5723_v17 }
  0xed   :  { %v5611_v48 = vpop.f32.mrf.mxu0 }
  0xee   :  { %v284_v49 = vadd.f32 %v5611_v48, %v6602_v47 }
  0xef   :  { %v275_v50 = vpop.f32.mrf.mxu0 }
  0xf0   :  { %v276_v51 = vadd.f32 %v6602_v47, %v275_v50  ;;  %v388_v53 = vsel %vm198_vm0, %v284_v49, -inf  ;;  %v454_v42 = vsel %vm198_vm0, %v284_v49, inf }
  0xf1   :  { %v5612_v52 = vpop.f32.mrf.mxu0 }
  0xf2   :  { %v386_v54 = vsel %vm198_vm0, %v276_v51, -inf  ;;  %v287_v55 = vadd.f32 %v5612_v52, %v6602_v47  ;;  %v452_v30 = vsel %vm198_vm0, %v276_v51, inf }
  0xf3   :  { %v389_v56 = vmax.f32 %v386_v54, %v388_v53  ;;  %v278_v57 = vpop.f32.mrf.mxu0  ;;  %v455_v46 = vmin.f32 %v452_v30, %v454_v42 }
  0xf4   :  { %v279_v58 = vadd.f32 %v6602_v47, %v278_v57  ;;  %v390_v60 = vsel %vm198_vm0, %v287_v55, -inf  ;;  %v456_v39 = vsel %vm198_vm0, %v287_v55, inf }
  0xf5   :  { %v5615_v59 = vpop.f32.mrf.mxu0 }
  0xf6   :  { %v387_v61 = vsel %vm198_vm0, %v279_v58, -inf  ;;  %v300_v0 = vadd.f32 %v5615_v59, %v6602_v47  ;;  %v453_v35 = vsel %vm198_vm0, %v279_v58, inf }
  0xf7   :  { %v391_v62 = vmax.f32 %v387_v61, %v390_v60  ;;  %v291_v63 = vpop.f32.mrf.mxu0  ;;  %v457_v43 = vmin.f32 %v453_v35, %v456_v39 }
  0xf8   :  { %v292_v1 = vadd.f32 %v6602_v47, %v291_v63  ;;  %v396_v6 = vsel %vm198_vm0, %v300_v0, -inf  ;;  %v462_v63 = vsel %vm198_vm0, %v300_v0, inf }
  0xf9   :  { %v5616_v2 = vpop.f32.mrf.mxu0 }
  0xfa   :  { %v392_v3 = vsel %vm198_vm0, %v292_v1, -inf  ;;  %v303_v7 = vadd.f32 %v5616_v2, %v6602_v47  ;;  %v458_v44 = vsel %vm198_vm0, %v292_v1, inf }
  0xfb   :  { %v393_v4 = vmax.f32 %v389_v56, %v392_v3  ;;  %v294_v5 = vpop.f32.mrf.mxu0  ;;  %v459_v54 = vmin.f32 %v455_v46, %v458_v44 }
  0xfc   :  { %v295_v8 = vadd.f32 %v6602_v47, %v294_v5  ;;  %v398_v14 = vsel %vm198_vm0, %v303_v7, -inf  ;;  %v464_v57 = vsel %vm198_vm0, %v303_v7, inf }
  0xfd   :  { %v5619_v9 = vpop.f32.mrf.mxu0  ;;  %v397_v10 = vmax.f32 %v393_v4, %v396_v6  ;;  %v463_v5 = vmin.f32 %v459_v54, %v462_v63 }
  0xfe   :  { %v394_v11 = vsel %vm198_vm0, %v295_v8, -inf  ;;  %v6621_v15 = vadd.f32 %v5619_v9, %v6602_v47  ;;  %v460_v40 = vsel %vm198_vm0, %v295_v8, inf }
  0xff   :  { %v395_v12 = vmax.f32 %v391_v62, %v394_v11  ;;  %v307_v13 = vpop.f32.mrf.mxu0  ;;  %v461_v51 = vmin.f32 %v457_v43, %v460_v40 }
 0x100   :  { %v308_v16 = vadd.f32 %v6602_v47, %v307_v13  ;;  %v404_v22 = vsel %vm198_vm0, %v6621_v15, -inf }
 0x101   :  { %v5620_v17 = vpop.f32.mrf.mxu0  ;;  %v399_v18 = vmax.f32 %v395_v12, %v398_v14  ;;  %v465_v2 = vmin.f32 %v461_v51, %v464_v57 }
 0x102   :  { %v400_v19 = vsel %vm198_vm0, %v308_v16, -inf  ;;  %v319_v23 = vadd.f32 %v5620_v17, %v6602_v47  ;;  %v466_v1 = vsel %vm198_vm0, %v308_v16, inf }
 0x103   :  { %v401_v20 = vmax.f32 %v397_v10, %v400_v19  ;;  %v310_v21 = vpop.f32.mrf.mxu0  ;;  %v467_v12 = vmin.f32 %v463_v5, %v466_v1 }
 0x104   :  { %v311_v24 = vadd.f32 %v6602_v47, %v310_v21  ;;  %v406_v31 = vsel %vm198_vm0, %v319_v23, -inf  ;;  %v472_v16 = vsel %vm198_vm0, %v319_v23, inf }
 0x105   :  { %v5623_v25 = vpop.f32.mrf.mxu0  ;;  %v405_v26 = vmax.f32 %v401_v20, %v404_v22 }
 0x106   :  { %v402_v27 = vsel %vm198_vm0, %v311_v24, -inf  ;;  %v332_v48 = vadd.f32 %v5623_v25, %v6602_v47  ;;  %v468_v59 = vsel %vm198_vm0, %v311_v24, inf }
 0x107   :  { %v403_v28 = vmax.f32 %v399_v18, %v402_v27  ;;  %v323_v29 = vpop.f32.mrf.mxu0  ;;  %v469_v9 = vmin.f32 %v465_v2, %v468_v59 }
 0x108   :  { %v324_v32 = vadd.f32 %v6602_v47, %v323_v29  ;;  %v419_v60 = vsel %vm198_vm0, %v332_v48, -inf  ;;  %v485_v17 = vsel %vm198_vm0, %v332_v48, inf }
 0x109   :  { %v5624_v33 = vpop.f32.mrf.mxu0  ;;  %v407_v34 = vmax.f32 %v403_v28, %v406_v31  ;;  %v473_v27 = vmin.f32 %v469_v9, %v472_v16 }
 0x10a   :  { %v408_v36 = vsel %vm198_vm0, %v324_v32, -inf  ;;  %v335_v61 = vadd.f32 %v5624_v33, %v6602_v47  ;;  %v474_v31 = vsel %vm198_vm0, %v324_v32, inf }
 0x10b   :  { %v409_v37 = vmax.f32 %v405_v26, %v408_v36  ;;  %v326_v38 = vpop.f32.mrf.mxu0  ;;  %v470_v26 = vsel %vm198_vm0, %v6621_v15, inf }
 0x10c   :  { %v327_v41 = vadd.f32 %v6602_v47, %v326_v38  ;;  %v420_v13 = vsel %vm198_vm0, %v335_v61, -inf  ;;  %v471_v30 = vmin.f32 %v467_v12, %v470_v26  ;;  %v486_v33 = vsel %vm198_vm0, %v335_v61, inf }
 0x10d   :  { %v5627_v45 = vpop.f32.mrf.mxu0 }
 0x10e   :  { %v410_v50 = vsel %vm198_vm0, %v327_v41, -inf  ;;  %v348_v55 = vadd.f32 %v5627_v45, %v6602_v47  ;;  %v476_v18 = vsel %vm198_vm0, %v327_v41, inf  ;;  %v475_v43 = vmin.f32 %v471_v30, %v474_v31  ;;  %v5769_v30 = vld [vmem:[#allocation2 + $0x10] ss:$28 sps:$4 sm:$0xff]  }
 0x10f   :  { %v411_v52 = vmax.f32 %v407_v34, %v410_v50  ;;  %v339_v53 = vpop.f32.mrf.mxu0  ;;  %v477_v35 = vmin.f32 %v473_v27, %v476_v18  ;;  %v5768_v27 = vld [vmem:[#allocation2] ss:$28 sps:$4 sm:$0xff]  }
 0x110   :  { %v340_v56 = vadd.f32 %v6602_v47, %v339_v53  ;;  %v425_v6 = vsel %vm198_vm0, %v348_v55, -inf  ;;  %v491_v36 = vsel %vm198_vm0, %v348_v55, inf  ;;  %935 = vmatpush1.bf16.msra.mxu1 %v5768_v27  ;;  %v6471_v27 = vmov 0.0  }
 0x111   :  { %v6645_v49 = vmax.f32 %v409_v37, %v411_v52  ;;  %v5628_v58 = vpop.f32.mrf.mxu0  ;;  %v478_v51 = vmin.f32 %v475_v43, %v477_v35 }
 0x112   :  { %v421_v62 = vsel %vm198_vm0, %v340_v56, -inf  ;;  %v351_v7 = vadd.f32 %v5628_v58, %v6602_v47  ;;  %v487_v0 = vsel %vm198_vm0, %v340_v56, inf }
 0x113   :  { %v422_v3 = vmax.f32 %v419_v60, %v421_v62  ;;  %v342_v4 = vpop.f32.mrf.mxu0  ;;  %v488_v28 = vmin.f32 %v485_v17, %v487_v0  ;;  %v413_v62 = vrot.slane %v6645_v49, 4 }
 0x114   :  { %v343_v8 = vadd.f32 %v6602_v47, %v342_v4  ;;  %v427_v21 = vsel %vm198_vm0, %v351_v7, -inf  ;;  %v493_v46 = vsel %vm198_vm0, %v351_v7, inf }
 0x115   :  { %v5631_v10 = vpop.f32.mrf.mxu0  ;;  %v426_v11 = vmax.f32 %v422_v3, %v425_v6  ;;  %v492_v32 = vmin.f32 %v488_v28, %v491_v36  ;;  %v479_v3 = vrot.slane %v478_v51, 4  ;;  %v414_v0 = vmax.f32 %v6645_v49, %v413_v62  ;;  %v5771_v28 = vld [vmem:[#allocation2 + $0x14] ss:$28 sps:$4 sm:$0xff]  }
 0x116   :  { %v423_v14 = vsel %vm198_vm0, %v343_v8, -inf  ;;  %v489_v22 = vsel %vm198_vm0, %v343_v8, inf  ;;  %v364_v24 = vadd.f32 %v5631_v10, %v6602_v47  ;;  %1016 = vmatprep.subr.bf16.mxu0 %v5771_v28  ;;  %v5775_v62 = vld [vmem:[#allocation2 + $0x158] ss:$28 sps:$4 sm:$0xff]   ;;  %v5831_v28 = vld [vmem:[%s8069_s5 + $0x348] ss:$28 sps:$4 sm:$0xff]  }
 0x117   :  { %v424_v19 = vmax.f32 %v420_v13, %v423_v14  ;;  %v355_v20 = vpop.f32.mrf.mxu0  ;;  %v490_v37 = vmin.f32 %v486_v33, %v489_v22  ;;  %v480_v17 = vmin.f32 %v478_v51, %v479_v3  ;;  %v415_v26 = vrot.slane %v414_v0, 2  ;;  %1017 = vmatpush1.bf16.msra.mxu0 %v5769_v30  ;;  %v5778_v3 = vld [vmem:[#allocation2 + $0x120] ss:$28 sps:$4 sm:$0xff]  }
 0x118   :  { %v356_v25 = vadd.f32 %v6602_v47, %v355_v20  ;;  %v433_v40 = vsel %vm198_vm0, %v364_v24, -inf  ;;  %v499_v63 = vsel %vm198_vm0, %v364_v24, inf  ;;  %v5845_v30 = vld [vmem:[%s8069_s5 + $0x2dc] ss:$28 sps:$4 sm:$0xff]  }
 0x119   :  { %v5632_v23 = vpop.f32.mrf.mxu0  ;;  %v428_v29 = vmax.f32 %v424_v19, %v427_v21  ;;  %v494_v54 = vmin.f32 %v490_v37, %v493_v46  ;;  %v416_v35 = vmax.f32 %v414_v0, %v415_v26  ;;  %v5821_v0 = vld [vmem:[%s8069_s5 + $0x74] ss:$28 sps:$4 sm:$0xff]   ;;  %v5796_v26 = vld [vmem:[#allocation2 + $0x1a0] ss:$28 sps:$4 sm:$0xff]  }
 0x11a   :  { %v429_v34 = vsel %vm198_vm0, %v356_v25, -inf  ;;  %v495_v15 = vsel %vm198_vm0, %v356_v25, inf  ;;  %v367_v41 = vadd.f32 %v5632_v23, %v6602_v47 }
 0x11b   :  { %v430_v38 = vmax.f32 %v426_v11, %v429_v34  ;;  %v358_v39 = vpop.f32.mrf.mxu0  ;;  %v496_v52 = vmin.f32 %v492_v32, %v495_v15  ;;  %v5774_v34 = vld [vmem:[#allocation2 + $0x194] ss:$28 sps:$4 sm:$0xff]   ;;  %v417_v43 = vrot.slane %v416_v35, 1 }
 0x11c   :  { %v359_v42 = vadd.f32 %v6602_v47, %v358_v39  ;;  %v435_v56 = vsel %vm198_vm0, %v367_v41, -inf  ;;  %v501_v7 = vsel %vm198_vm0, %v367_v41, inf  ;;  %v6470_v39 = vmov 0   ;;  %961 = vmatprep.subr.bf16.mxu1 %v5774_v34  ;;  %v5851_v34 = vld [vmem:[%s8069_s5 + $0x2a4] ss:$28 sps:$4 sm:$0xff]  }
 0x11d   :  { %v5635_v44 = vpop.f32.mrf.mxu0  ;;  %v434_v45 = vmax.f32 %v430_v38, %v433_v40  ;;  %v500_v5 = vmin.f32 %v496_v52, %v499_v63  ;;  %952 = vmatprep.mubr.bf16.mxu1 %v6470_v39  ;;  %1034 = vmatprep.mubr.bf16.mxu0 %v6470_v39  ;;  %v5780_v63 = vld [vmem:[#allocation2 + $0x124] ss:$28 sps:$4 sm:$0xff]  }
 0x11e   :  { %v431_v48 = vsel %vm198_vm0, %v359_v42, -inf  ;;  %v497_v50 = vsel %vm198_vm0, %v359_v42, inf  ;;  %v380_v57 = vadd.f32 %v5635_v44, %v6602_v47 }
 0x11f   :  { %v432_v53 = vmax.f32 %v428_v29, %v431_v48  ;;  %v371_v55 = vpop.f32.mrf.mxu0  ;;  %v498_v59 = vmin.f32 %v494_v54, %v497_v50  ;;  %v481_v29 = vrot.slane %v480_v17, 2  ;;  %v418_v50 = vmax.f32 %v416_v35, %v417_v43  ;;  %v5806_v54 = vld [vmem:[%s8069_s5 + $0x18c] ss:$28 sps:$4 sm:$0xff]   ;;  %v5799_v35 = vld [vmem:[#allocation2 + $0xf8] ss:$28 sps:$4 sm:$0xff]  }
 0x120   :  { %v372_v58 = vadd.f32 %v6602_v47, %v371_v55  ;;  %v441_v8 = vsel %vm198_vm0, %v380_v57, -inf  ;;  %v507_v20 = vsel %vm198_vm0, %v380_v57, inf  ;;  %3598 = vmatprep.subr.bf16.mxu0 %v5806_v54  ;;  %v5772_v57 = vld [vmem:[#allocation2 + $0x190] ss:$28 sps:$4 sm:$0xff]   ;;  %v5840_v54 = vld [vmem:[%s8069_s5 + $0x498] ss:$28 sps:$4 sm:$0xff]  }
 0x121   :  { %v5636_v60 = vpop.f32.mrf.mxu0  ;;  %v436_v61 = vmax.f32 %v432_v53, %v435_v56  ;;  %v502_v13 = vmin.f32 %v498_v59, %v501_v7  ;;  %v482_v37 = vmin.f32 %v480_v17, %v481_v29  ;;  %v5777_v59 = vld [vmem:[#allocation2 + $0x15c] ss:$28 sps:$4 sm:$0xff]   ;;  %v5781_v7 = vld [vmem:[#allocation2 + $0xe8] ss:$28 sps:$4 sm:$0xff]   ;;  %v5819_v17 = vld [vmem:[%s8069_s5 + $0x70] ss:$28 sps:$4 sm:$0xff]  }
 0x122   :  { %v437_v1 = vsel %vm198_vm0, %v372_v58, -inf  ;;  %v503_v2 = vsel %vm198_vm0, %v372_v58, inf  ;;  %v383_v9 = vadd.f32 %v5636_v60, %v6602_v47  ;;  %v5804_v60 = vld [vmem:[%s8069_s5 + $0x188] ss:$28 sps:$4 sm:$0xff]   ;;  %v5837_v29 = vld [vmem:[%s8069_s5 + $0x310] ss:$28 sps:$4 sm:$0xff]  }
 0x123   :  { %v438_v4 = vmax.f32 %v434_v45, %v437_v1  ;;  %v374_v6 = vpop.f32.mrf.mxu0  ;;  %v504_v12 = vmin.f32 %v500_v5, %v503_v2  ;;  %v483_v41 = vrot.slane %v482_v37, 1  ;;  %v5807_v1 = vld [vmem:[%s8069_s5 + $0x150] ss:$28 sps:$4 sm:$0xff]   ;;  %v5812_v2 = vld [vmem:[%s8069_s5 + $0x11c] ss:$28 sps:$4 sm:$0xff]  }
 0x124   :  { %v375_v10 = vadd.f32 %v6602_v47, %v374_v6  ;;  %v443_v21 = vsel %vm198_vm0, %v383_v9, -inf  ;;  %v509_v22 = vsel %vm198_vm0, %v383_v9, inf  ;;  %v5810_v5 = vld [vmem:[%s8069_s5 + $0x118] ss:$28 sps:$4 sm:$0xff]   ;;  %v5815_v6 = vld [vmem:[%s8069_s5 + $0xe4] ss:$28 sps:$4 sm:$0xff]  }
 0x125   :  { %v442_v11 = vmax.f32 %v438_v4, %v441_v8  ;;  %v508_v24 = vmin.f32 %v504_v12, %v507_v20  ;;  %v484_v46 = vmin.f32 %v482_v37, %v483_v41  ;;  %v5783_v4 = vld [vmem:[#allocation2 + $0xec] ss:$28 sps:$4 sm:$0xff]   ;;  %v5786_v8 = vld [vmem:[#allocation2 + $0xb4] ss:$28 sps:$4 sm:$0xff]   ;;  %v5813_v9 = vld [vmem:[%s8069_s5 + $0xe0] ss:$28 sps:$4 sm:$0xff]  }
 0x126   :  { %v439_v14 = vsel %vm198_vm0, %v375_v10, -inf  ;;  %v505_v16 = vsel %vm198_vm0, %v375_v10, inf  ;;  %v5818_v10 = vld [vmem:[%s8069_s5 + $0xac] ss:$28 sps:$4 sm:$0xff]   ;;  %v5789_v12 = vld [vmem:[#allocation2 + $0x7c] ss:$28 sps:$4 sm:$0xff]  }
 0x127   :  { %v440_v18 = vmax.f32 %v436_v61, %v439_v14  ;;  %v506_v19 = vmin.f32 %v502_v13, %v505_v16  ;;  %v5809_v61 = vld [vmem:[%s8069_s5 + $0x154] ss:$28 sps:$4 sm:$0xff]   ;;  %v5816_v13 = vld [vmem:[%s8069_s5 + $0xa8] ss:$28 sps:$4 sm:$0xff]  }
 0x128   :  { %v5787_v14 = vld [vmem:[#allocation2 + $0x78] ss:$28 sps:$4 sm:$0xff]   ;;  %v5792_v16 = vld [vmem:[#allocation2 + $0x44] ss:$28 sps:$4 sm:$0xff]   ;;  %v5795_v20 = vld [vmem:[#allocation2 + $0xc] ss:$28 sps:$4 sm:$0xff]  }
 0x129   :  { %v444_v47 = vmax.f32 %v440_v18, %v443_v21  ;;  %v510_v25 = vmin.f32 %v506_v19, %v509_v22  ;;  %v5824_v18 = vld [vmem:[%s8069_s5 + $0x3c] ss:$28 sps:$4 sm:$0xff]   ;;  %v5827_v22 = vld [vmem:[%s8069_s5 + $0x4] ss:$28 sps:$4 sm:$0xff]   ;;  %v5857_v37 = vld [vmem:[%s8069_s5 + $0x26c] ss:$28 sps:$4 sm:$0xff]  }
 0x12a   :  { %v5790_v19 = vld [vmem:[#allocation2 + $0x40] ss:$28 sps:$4 sm:$0xff]   ;;  %v5822_v21 = vld [vmem:[%s8069_s5 + $0x38] ss:$28 sps:$4 sm:$0xff]   ;;  %v5801_v41 = vld [vmem:[#allocation2 + $0x88] ss:$28 sps:$4 sm:$0xff]  }
 0x12b   :  { %v445_v49 = vmax.f32 %v442_v11, %v444_v47  ;;  %v511_v23 = vmin.f32 %v508_v24, %v510_v25  ;;  %v5784_v11 = vld [vmem:[#allocation2 + $0xb0] ss:$28 sps:$4 sm:$0xff]   ;;  %v5793_v24 = vld [vmem:[#allocation2 + $0x8] ss:$28 sps:$4 sm:$0xff]   ;;  %v5825_v47 = vld [vmem:[%s8069_s5] ss:$28 sps:$4 sm:$0xff]  }
 0x12c   :  { %v5833_v25 = vld [vmem:[%s8069_s5 + $0x34c] ss:$28 sps:$4 sm:$0xff]  }
 0x12d   :  { %v446_v31 = vrot.slane %v445_v49, 4  ;;  %v512_v33 = vrot.slane %v511_v23, 4  ;;  %v5802_v43 = vld [vmem:[#allocation2 + $0x50] ss:$28 sps:$4 sm:$0xff]  }
 0x12f   :  { %v447_v36 = vmax.f32 %v445_v49, %v446_v31  ;;  %v513_v38 = vmin.f32 %v511_v23, %v512_v33  ;;  %v5839_v49 = vld [vmem:[%s8069_s5 + $0x314] ss:$28 sps:$4 sm:$0xff]   ;;  %v5797_v23 = vld [vmem:[#allocation2 + $0x168] ss:$28 sps:$4 sm:$0xff]  }
 0x130   :  { %v5798_v31 = vld [vmem:[#allocation2 + $0x130] ss:$28 sps:$4 sm:$0xff]   ;;  %v5843_v33 = vld [vmem:[%s8069_s5 + $0x2d8] ss:$28 sps:$4 sm:$0xff]  }
 0x131   :  { %v448_v40 = vrot.slane %v447_v36, 2  ;;  %v514_v15 = vrot.slane %v513_v38, 2 }
 0x133   :  { %v515_v42 = vmin.f32 %v513_v38, %v514_v15  ;;  %v449_v32 = vmax.f32 %v447_v36, %v448_v40  ;;  %v5849_v36 = vld [vmem:[%s8069_s5 + $0x2a0] ss:$28 sps:$4 sm:$0xff]   ;;  %v5855_v40 = vld [vmem:[%s8069_s5 + $0x268] ss:$28 sps:$4 sm:$0xff]   ;;  %v5863_v15 = vld [vmem:[%s8069_s5 + $0x234] ss:$28 sps:$4 sm:$0xff]  }
 0x134   :  { %v5800_v38 = vld [vmem:[#allocation2 + $0xc0] ss:$28 sps:$4 sm:$0xff]  }
 0x135   :  { %v516_v44 = vrot.slane %v515_v42, 1  ;;  %v450_v45 = vrot.slane %v449_v32, 1 }
 0x137   :  { %v517_v48 = vmin.f32 %v515_v42, %v516_v44  ;;  %v451_v51 = vmax.f32 %v449_v32, %v450_v45  ;;  %v5861_v42 = vld [vmem:[%s8069_s5 + $0x230] ss:$28 sps:$4 sm:$0xff]   ;;  %v5803_v32 = vld [vmem:[#allocation2 + $0x18] ss:$28 sps:$4 sm:$0xff]   ;;  %v5828_v45 = vld [vmem:[%s8069_s5 + $0x508] ss:$28 sps:$4 sm:$0xff]  }
 0x138   :  { %v5830_v44 = vld [vmem:[%s8069_s5 + $0x50c] ss:$28 sps:$4 sm:$0xff]  }
 0x139   :  { %v525_v52 = vsel %vm520_vm1, %v517_v48, %v484_v46  ;;  %v521_v53 = vsel %vm520_vm1, %v451_v51, %v418_v50  ;;  %v5836_v46 = vld [vmem:[%s8069_s5 + $0x4d4] ss:$28 sps:$4 sm:$0xff]   ;;  %v5869_v48 = vld [vmem:[%s8069_s5 + $0x1fc] ss:$28 sps:$4 sm:$0xff]  }
 0x13a   :  { %526 = vrot.lane.b32.xlu0 %v525_v52, %s6468_s19  ;;  %v5834_v50 = vld [vmem:[%s8069_s5 + $0x4d0] ss:$28 sps:$4 sm:$0xff]   ;;  %v5867_v51 = vld [vmem:[%s8069_s5 + $0x1f8] ss:$28 sps:$4 sm:$0xff]  }
 0x13b   :  { %v5842_v52 = vld [vmem:[%s8069_s5 + $0x49c] ss:$28 sps:$4 sm:$0xff]  }
 0x1ac   :  { %v527_v55 = vpop.permute.xlu0 %526 }
 0x1ad   :  { %v529_v56 = vsel %vm198_vm0, %v521_v53, %v527_v55  ;;  %v5875_v53 = vld [vmem:[%s8069_s5 + $0x1c4] ss:$28 sps:$4 sm:$0xff]  }
 0x1ae   :  { %v6703_v58 = vpack.c.bf16 %v529_v56, %v529_v56  ;;  %v5873_v55 = vld [vmem:[%s8069_s5 + $0x1c0] ss:$28 sps:$4 sm:$0xff]  }
 0x1af   :  { %v5848_v56 = vld [vmem:[%s8069_s5 + $0x464] ss:$28 sps:$4 sm:$0xff]  }
 0x1b0   :  { %953 = vmatmul.mubr.bf16.vlgmr.msra.gmra.mxu1 %v6703_v58  ;;  %1035 = vmatmul.mubr.bf16.vlgmr.msra.gmra.mxu0 %v6703_v58 }
 0x1b1   :  { %962 = vmatpush1.bf16.msra.mxu1 %v5772_v57  ;;  %993 = vmatprep.mubr.bf16.mxu1 %v6470_v39  ;;  %v5881_v57 = vld [vmem:[%s8069_s5 + $0x88c] ss:$28 sps:$4 sm:$0xff]  }
 0x1b2   :  { %963 = vmatprep.subr.bf16.mxu1 %v5777_v59  ;;  %3599 = vmatpush1.bf16.msra.mxu0 %v5804_v60  ;;  %v5854_v59 = vld [vmem:[%s8069_s5 + $0x42c] ss:$28 sps:$4 sm:$0xff]  }
 0x1b3   :  { %3600 = vmatprep.subr.bf16.mxu0 %v5809_v61  ;;  %v5852_v60 = vld [vmem:[%s8069_s5 + $0x428] ss:$28 sps:$4 sm:$0xff]   ;;  %v5860_v61 = vld [vmem:[%s8069_s5 + $0x3f4] ss:$28 sps:$4 sm:$0xff]  }
 0x1b5   :  { %964 = vmatpush1.bf16.msra.mxu1 %v5775_v62  ;;  %v5858_v62 = vld [vmem:[%s8069_s5 + $0x3f0] ss:$28 sps:$4 sm:$0xff]  }
 0x1b6   :  { %965 = vmatprep.subr.bf16.mxu1 %v5780_v63  ;;  %3601 = vmatpush1.bf16.msra.mxu0 %v5807_v1  ;;  %v5866_v63 = vld [vmem:[%s8069_s5 + $0x3bc] ss:$28 sps:$4 sm:$0xff]  }
 0x1b7   :  { %3602 = vmatprep.subr.bf16.mxu0 %v5812_v2  ;;  %v5864_v1 = vld [vmem:[%s8069_s5 + $0x3b8] ss:$28 sps:$4 sm:$0xff]   ;;  %v5872_v2 = vld [vmem:[%s8069_s5 + $0x384] ss:$28 sps:$4 sm:$0xff]  }
 0x1b9   :  { %966 = vmatpush1.bf16.msra.mxu1 %v5778_v3  ;;  %v5870_v3 = vld [vmem:[%s8069_s5 + $0x380] ss:$28 sps:$4 sm:$0xff]  }
 0x1ba   :  { %967 = vmatprep.subr.bf16.mxu1 %v5783_v4  ;;  %3603 = vmatpush1.bf16.msra.mxu0 %v5810_v5  ;;  %v5878_v4 = vld [vmem:[%s8069_s5 + $0x6cc] ss:$28 sps:$4 sm:$0xff]  }
 0x1bb   :  { %3604 = vmatprep.subr.bf16.mxu0 %v5815_v6  ;;  %v5876_v5 = vld [vmem:[%s8069_s5 + $0x6c8] ss:$28 sps:$4 sm:$0xff]   ;;  %v5884_v6 = vld [vmem:[%s8069_s5 + $0x694] ss:$28 sps:$4 sm:$0xff]  }
 0x1bd   :  { %968 = vmatpush1.bf16.msra.mxu1 %v5781_v7  ;;  %v5882_v7 = vld [vmem:[%s8069_s5 + $0x690] ss:$28 sps:$4 sm:$0xff]  }
 0x1be   :  { %969 = vmatprep.subr.bf16.mxu1 %v5786_v8  ;;  %3605 = vmatpush1.bf16.msra.mxu0 %v5813_v9  ;;  %v5890_v8 = vld [vmem:[%s8069_s5 + $0x65c] ss:$28 sps:$4 sm:$0xff]  }
 0x1bf   :  { %3606 = vmatprep.subr.bf16.mxu0 %v5818_v10  ;;  %v5888_v9 = vld [vmem:[%s8069_s5 + $0x658] ss:$28 sps:$4 sm:$0xff]   ;;  %v5896_v10 = vld [vmem:[%s8069_s5 + $0x624] ss:$28 sps:$4 sm:$0xff]  }
 0x1c1   :  { %970 = vmatpush1.bf16.msra.mxu1 %v5784_v11  ;;  %v5894_v11 = vld [vmem:[%s8069_s5 + $0x620] ss:$28 sps:$4 sm:$0xff]  }
 0x1c2   :  { %971 = vmatprep.subr.bf16.mxu1 %v5789_v12  ;;  %3607 = vmatpush1.bf16.msra.mxu0 %v5816_v13  ;;  %v5902_v12 = vld [vmem:[%s8069_s5 + $0x5ec] ss:$28 sps:$4 sm:$0xff]  }
 0x1c3   :  { %3608 = vmatprep.subr.bf16.mxu0 %v5821_v0  ;;  %v5900_v13 = vld [vmem:[%s8069_s5 + $0x5e8] ss:$28 sps:$4 sm:$0xff]   ;;  %v5908_v0 = vld [vmem:[%s8069_s5 + $0x5b4] ss:$28 sps:$4 sm:$0xff]  }
 0x1c5   :  { %972 = vmatpush1.bf16.msra.mxu1 %v5787_v14  ;;  %v5906_v14 = vld [vmem:[%s8069_s5 + $0x5b0] ss:$28 sps:$4 sm:$0xff]  }
 0x1c6   :  { %973 = vmatprep.subr.bf16.mxu1 %v5792_v16  ;;  %3609 = vmatpush1.bf16.msra.mxu0 %v5819_v17  ;;  %v5914_v16 = vld [vmem:[%s8069_s5 + $0x57c] ss:$28 sps:$4 sm:$0xff]  }
 0x1c7   :  { %3610 = vmatprep.subr.bf16.mxu0 %v5824_v18  ;;  %v5912_v17 = vld [vmem:[%s8069_s5 + $0x578] ss:$28 sps:$4 sm:$0xff]   ;;  %v5920_v18 = vld [vmem:[%s8069_s5 + $0x544] ss:$28 sps:$4 sm:$0xff]  }
 0x1c9   :  { %974 = vmatpush1.bf16.msra.mxu1 %v5790_v19  ;;  %v5918_v19 = vld [vmem:[%s8069_s5 + $0x540] ss:$28 sps:$4 sm:$0xff]  }
 0x1ca   :  { %975 = vmatprep.subr.bf16.mxu1 %v5795_v20  ;;  %3611 = vmatpush1.bf16.msra.mxu0 %v5822_v21  ;;  %v5926_v20 = vld [vmem:[%s8069_s5 + $0xc0c] ss:$28 sps:$4 sm:$0xff]   ;;  %v597_v21 = vlaneseq }
 0x1cb   :  { %3612 = vmatprep.subr.bf16.mxu0 %v5827_v22 }
 0x1cc   :  { %v6915_v22 = vshrl.u32 %v597_v21, 7  ;;  %v5938_v21 = vld [vmem:[%s8069_s5 + $0xb9c] ss:$28 sps:$4 sm:$0xff]  }
 0x1cd   :  { %976 = vmatpush1.bf16.msra.mxu1 %v5793_v24 }
 0x1ce   :  { %5637 = vmatprep.subr.bf16.mxu1 %v6471_v27  ;;  %3613 = vmatpush1.bf16.msra.mxu0 %v5825_v47  ;;  %v599_v24 = vsub.s32 0, %v6915_v22  ;;  %v6921_v47 = vld [vmem:[%s8068_s4] sm:$0xff] }
 0x1cf   :  { %3614 = vmatprep.subr.bf16.mxu0 %v5833_v25  ;;  %v603_v25 = vsub.s32 1, %v6915_v22 }
 0x1d0   :  { %994 = vmatmul.mubr.bf16.vlgmr.msra.gmra.mxu1 %v6703_v58 }
 0x1d1   :  { %5638 = vmatpush3.bf16.msra.mxu1 %v5796_v26  ;;  %5653 = vmatprep.mubr.msk.bf16.mxu1 %vm6472_vm2, %v6471_v27  ;;  %v619_v26 = vsub.s32 5, %v6915_v22 }
 0x1d2   :  { %5639 = vmatprep.subr.bf16.mxu1 %v6471_v27  ;;  %3615 = vmatpush2.bf16.msra.mxu0 %v5831_v28  ;;  %v600_v28 = vrot.slane %v6921_v47, %v599_v24 }
 0x1d3   :  { %3616 = vmatprep.subr.bf16.mxu0 %v5839_v49  ;;  %v604_v49 = vrot.slane %v6921_v47, %v603_v25 }
 0x1d5   :  { %5640 = vmatpush3.bf16.msra.mxu1 %v5797_v23  ;;  %v620_v23 = vrot.slane %v6921_v47, %v619_v26 }
 0x1d6   :  { %5641 = vmatprep.subr.bf16.mxu1 %v6471_v27  ;;  %3617 = vmatpush2.bf16.msra.mxu0 %v5837_v29 }
 0x1d7   :  { %3618 = vmatprep.subr.bf16.mxu0 %v5845_v30 }
 0x1d9   :  { %5642 = vmatpush3.bf16.msra.mxu1 %v5798_v31 }
 0x1da   :  { %5643 = vmatprep.subr.bf16.mxu1 %v6471_v27  ;;  %3619 = vmatpush2.bf16.msra.mxu0 %v5843_v33 }
 0x1db   :  { %3620 = vmatprep.subr.bf16.mxu0 %v5851_v34 }
 0x1dd   :  { %5644 = vmatpush3.bf16.msra.mxu1 %v5799_v35 }
 0x1de   :  { %5645 = vmatprep.subr.bf16.mxu1 %v6471_v27  ;;  %3621 = vmatpush2.bf16.msra.mxu0 %v5849_v36 }
 0x1df   :  { %3622 = vmatprep.subr.bf16.mxu0 %v5857_v37 }
 0x1e1   :  { %5646 = vmatpush3.bf16.msra.mxu1 %v5800_v38 }
 0x1e2   :  { %5647 = vmatprep.subr.bf16.mxu1 %v6471_v27  ;;  %3623 = vmatpush2.bf16.msra.mxu0 %v5855_v40 }
 0x1e3   :  { %3624 = vmatprep.subr.bf16.mxu0 %v5863_v15 }
 0x1e5   :  { %5648 = vmatpush3.bf16.msra.mxu1 %v5801_v41 }
 0x1e6   :  { %5649 = vmatprep.subr.bf16.mxu1 %v6471_v27  ;;  %3625 = vmatpush2.bf16.msra.mxu0 %v5861_v42 }
 0x1e7   :  { %3626 = vmatprep.subr.bf16.mxu0 %v5869_v48 }
 0x1e9   :  { %5650 = vmatpush3.bf16.msra.mxu1 %v5802_v43 }
 0x1ea   :  { %5651 = vmatprep.subr.bf16.mxu1 %v6471_v27  ;;  %3627 = vmatpush2.bf16.msra.mxu0 %v5867_v51  ;;  %v5893_v51 = vld [vmem:[%s8069_s5 + $0x81c] ss:$28 sps:$4 sm:$0xff]  }
 0x1eb   :  { %3628 = vmatprep.subr.bf16.mxu0 %v5875_v53  ;;  %v5899_v53 = vld [vmem:[%s8069_s5 + $0x7e4] ss:$28 sps:$4 sm:$0xff]  }
 0x1ed   :  { %5652 = vmatpush3.bf16.msra.mxu1 %v5803_v32 }
 0x1ee   :  { %3639 = vmatprep.subr.bf16.mxu1 %v5830_v44  ;;  %3629 = vmatpush2.bf16.msra.mxu0 %v5873_v55  ;;  %v5879_v44 = vld [vmem:[%s8069_s5 + $0x888] ss:$28 sps:$4 sm:$0xff]  }
 0x1ef   :  { %3680 = vmatprep.subr.bf16.mxu0 %v5881_v57  ;;  %v5905_v55 = vld [vmem:[%s8069_s5 + $0x7ac] ss:$28 sps:$4 sm:$0xff]   ;;  %v5911_v57 = vld [vmem:[%s8069_s5 + $0x774] ss:$28 sps:$4 sm:$0xff]  }
 0x1f0   :  { %5654 = vmatmul.mubr.bf16.vlgmr.msra.gmra.mxu1 %v6703_v58  ;;  %v5846_v58 = vld [vmem:[%s8069_s5 + $0x460] ss:$28 sps:$4 sm:$0xff]  }
 0x1f1   :  { %3640 = vmatpush1.bf16.msra.mxu1 %v5828_v45 }
 0x1f2   :  { %3641 = vmatprep.subr.bf16.mxu1 %v5836_v46  ;;  %v5887_v46 = vld [vmem:[%s8069_s5 + $0x854] ss:$28 sps:$4 sm:$0xff]  }
 0x1f5   :  { %3642 = vmatpush1.bf16.msra.mxu1 %v5834_v50  ;;  %v5885_v50 = vld [vmem:[%s8069_s5 + $0x850] ss:$28 sps:$4 sm:$0xff]  }
 0x1f6   :  { %3643 = vmatprep.subr.bf16.mxu1 %v5842_v52  ;;  %v5891_v52 = vld [vmem:[%s8069_s5 + $0x818] ss:$28 sps:$4 sm:$0xff]  }
 0x1f9   :  { %3644 = vmatpush1.bf16.msra.mxu1 %v5840_v54  ;;  %v5897_v54 = vld [vmem:[%s8069_s5 + $0x7e0] ss:$28 sps:$4 sm:$0xff]  }
 0x1fa   :  { %3645 = vmatprep.subr.bf16.mxu1 %v5848_v56  ;;  %v5903_v56 = vld [vmem:[%s8069_s5 + $0x7a8] ss:$28 sps:$4 sm:$0xff]  }
 0x1fd   :  { %3646 = vmatpush1.bf16.msra.mxu1 %v5846_v58  ;;  %v607_v58 = vsub.s32 2, %v6915_v22 }
 0x1fe   :  { %3647 = vmatprep.subr.bf16.mxu1 %v5854_v59  ;;  %v5909_v59 = vld [vmem:[%s8069_s5 + $0x770] ss:$28 sps:$4 sm:$0xff]  }
 0x201   :  { %3648 = vmatpush1.bf16.msra.mxu1 %v5852_v60  ;;  %v611_v60 = vsub.s32 3, %v6915_v22 }
 0x202   :  { %3649 = vmatprep.subr.bf16.mxu1 %v5860_v61  ;;  %v5917_v61 = vld [vmem:[%s8069_s5 + $0x73c] ss:$28 sps:$4 sm:$0xff]  }
 0x205   :  { %3650 = vmatpush1.bf16.msra.mxu1 %v5858_v62  ;;  %v608_v62 = vrot.slane %v6921_v47, %v607_v58 }
 0x206   :  { %3651 = vmatprep.subr.bf16.mxu1 %v5866_v63  ;;  %v612_v63 = vrot.slane %v6921_v47, %v611_v60 }
 0x209   :  { %3652 = vmatpush1.bf16.msra.mxu1 %v5864_v1  ;;  %v5915_v1 = vld [vmem:[%s8069_s5 + $0x738] ss:$28 sps:$4 sm:$0xff]  }
 0x20a   :  { %3653 = vmatprep.subr.bf16.mxu1 %v5872_v2 }
 0x20d   :  { %3654 = vmatpush1.bf16.msra.mxu1 %v5870_v3  ;;  %v5923_v3 = vld [vmem:[%s8069_s5 + $0x704] ss:$28 sps:$4 sm:$0xff]  }
 0x20e   :  { %3655 = vmatprep.subr.bf16.mxu1 %v5878_v4 }
 0x211   :  { %3656 = vmatpush2.bf16.msra.mxu1 %v5876_v5 }
 0x212   :  { %3657 = vmatprep.subr.bf16.mxu1 %v5884_v6 }
 0x215   :  { %3658 = vmatpush2.bf16.msra.mxu1 %v5882_v7  ;;  %v5921_v7 = vld [vmem:[%s8069_s5 + $0x700] ss:$28 sps:$4 sm:$0xff]  }
 0x216   :  { %3659 = vmatprep.subr.bf16.mxu1 %v5890_v8 }
 0x219   :  { %3660 = vmatpush2.bf16.msra.mxu1 %v5888_v9 }
 0x21a   :  { %3661 = vmatprep.subr.bf16.mxu1 %v5896_v10  ;;  %v5929_v10 = vld [vmem:[%s8069_s5 + $0xa4c] ss:$28 sps:$4 sm:$0xff]  }
 0x21d   :  { %3662 = vmatpush2.bf16.msra.mxu1 %v5894_v11 }
 0x21e   :  { %3663 = vmatprep.subr.bf16.mxu1 %v5902_v12 }
 0x221   :  { %3664 = vmatpush2.bf16.msra.mxu1 %v5900_v13 }
 0x222   :  { %3665 = vmatprep.subr.bf16.mxu1 %v5908_v0  ;;  %v5924_v0 = vld [vmem:[%s8069_s5 + $0xc08] ss:$28 sps:$4 sm:$0xff]  }
 0x225   :  { %3666 = vmatpush2.bf16.msra.mxu1 %v5906_v14  ;;  %v5927_v14 = vld [vmem:[%s8069_s5 + $0xa48] ss:$28 sps:$4 sm:$0xff]  }
 0x226   :  { %3667 = vmatprep.subr.bf16.mxu1 %v5914_v16 }
 0x229   :  { %3668 = vmatpush2.bf16.msra.mxu1 %v5912_v17  ;;  %v5932_v17 = vld [vmem:[%s8069_s5 + $0xbd4] ss:$28 sps:$4 sm:$0xff]  }
 0x22a   :  { %3669 = vmatprep.subr.bf16.mxu1 %v5920_v18  ;;  %v5935_v18 = vld [vmem:[%s8069_s5 + $0xa14] ss:$28 sps:$4 sm:$0xff]  }
 0x22d   :  { %3670 = vmatpush2.bf16.msra.mxu1 %v5918_v19  ;;  %v5930_v19 = vld [vmem:[%s8069_s5 + $0xbd0] ss:$28 sps:$4 sm:$0xff]  }
 0x22e   :  { %3721 = vmatprep.subr.bf16.mxu1 %v5926_v20  ;;  %v5933_v20 = vld [vmem:[%s8069_s5 + $0xa10] ss:$28 sps:$4 sm:$0xff]  }
 0x270   :  { %v954_v29 = vpop.f32.mrf.mxu1  ;;  %v6934_v30 = vpop.f32.mrf.mxu0 }
 0x271   :  { %v955_v31 = vadd.f32 %v954_v29, %v600_v28  ;;  %v5941_v28 = vld [vmem:[%s8069_s5 + $0x9dc] ss:$28 sps:$4 sm:$0xff]   ;;  %v5944_v29 = vld [vmem:[%s8069_s5 + $0xb64] ss:$28 sps:$4 sm:$0xff]  }
 0x272   :  { %v956_v33 = vpop.f32.mrf.mxu1  ;;  %v1038_v34 = vpop.f32.mrf.mxu0 }
 0x273   :  { %v957_v35 = vadd.f32 %v956_v33, %v604_v49  ;;  %v1039_v36 = vadd.f32 %v1038_v34, %v620_v23  ;;  %v1083_v37 = vmax.f32 %v955_v31, 0.0  ;;  %v5936_v49 = vld [vmem:[%s8069_s5 + $0xb98] ss:$28 sps:$4 sm:$0xff]   ;;  %v5947_v31 = vld [vmem:[%s8069_s5 + $0x9a4] ss:$28 sps:$4 sm:$0xff]  }
 0x274   :  { %v958_v38 = vpop.f32.mrf.mxu1  ;;  %v1040_v40 = vpop.f32.mrf.mxu0  ;;  %v5939_v23 = vld [vmem:[%s8069_s5 + $0x9d8] ss:$28 sps:$4 sm:$0xff]   ;;  %v5942_v33 = vld [vmem:[%s8069_s5 + $0xb60] ss:$28 sps:$4 sm:$0xff]  }
 0x275   :  { %v1084_v15 = vmax.f32 %v957_v35, 0.0  ;;  %v1088_v41 = vmax.f32 %v1039_v36, 0.0  ;;  %v6941_v45 = vpack.c.bf16 %v1083_v37, %v1083_v37  ;;  %v5945_v34 = vld [vmem:[%s8069_s5 + $0x9a0] ss:$28 sps:$4 sm:$0xff]   ;;  %v5950_v35 = vld [vmem:[%s8069_s5 + $0xb2c] ss:$28 sps:$4 sm:$0xff]  }
 0x276   :  { %v959_v42 = vpop.f32.mrf.mxu1  ;;  %v1041_v43 = vpop.f32.mrf.mxu0  ;;  %v5953_v36 = vld [vmem:[%s8069_s5 + $0x96c] ss:$28 sps:$4 sm:$0xff]   ;;  %v615_v40 = vsub.s32 4, %v6915_v22 }
 0x277   :  { %v6936_v32 = vpack.c.bf16 %v1084_v15, %v1084_v15  ;;  %v6946_v48 = vpack.c.bf16 %v1088_v41, %v1088_v41  ;;  %v5948_v37 = vld [vmem:[%s8069_s5 + $0xb28] ss:$28 sps:$4 sm:$0xff]   ;;  %v5956_v15 = vld [vmem:[%s8069_s5 + $0xaf4] ss:$28 sps:$4 sm:$0xff]   ;;  %v623_v42 = vsub.s32 6, %v6915_v22 }
 0x278   :  { %v5951_v38 = vld [vmem:[%s8069_s5 + $0x968] ss:$28 sps:$4 sm:$0xff]   ;;  %v5959_v41 = vld [vmem:[%s8069_s5 + $0x934] ss:$28 sps:$4 sm:$0xff]  }
 0x279   :  { %3630 = vmatprep.mubr.bf16.mxu0 %v6936_v32  ;;  %v5954_v43 = vld [vmem:[%s8069_s5 + $0xaf0] ss:$28 sps:$4 sm:$0xff]  }
 0x27a   :  { %3631 = vmatmul.mubr.bf16.vlgmr.msra.gmra.mxu0 %v6941_v45 }
 0x27b   :  { %3681 = vmatpush1.bf16.msra.mxu0 %v5879_v44  ;;  %3712 = vmatprep.mubr.bf16.mxu0 %v6946_v48  ;;  %v5957_v44 = vld [vmem:[%s8069_s5 + $0x930] ss:$28 sps:$4 sm:$0xff]  }
 0x27c   :  { %3682 = vmatprep.subr.bf16.mxu0 %v5887_v46  ;;  %v616_v46 = vrot.slane %v6921_v47, %v615_v40 }
 0x27f   :  { %3683 = vmatpush1.bf16.msra.mxu0 %v5885_v50  ;;  %v5962_v50 = vld [vmem:[%s8069_s5 + $0xabc] ss:$28 sps:$4 sm:$0xff]  }
 0x280   :  { %3684 = vmatprep.subr.bf16.mxu0 %v5893_v51  ;;  %v5965_v51 = vld [vmem:[%s8069_s5 + $0x8fc] ss:$28 sps:$4 sm:$0xff]  }
 0x283   :  { %3685 = vmatpush1.bf16.msra.mxu0 %v5891_v52  ;;  %v624_v52 = vrot.slane %v6921_v47, %v623_v42  ;;  %v5971_v47 = vld [vmem:[%s8069_s5 + $0x8c4] ss:$28 sps:$4 sm:$0xff]  }
 0x284   :  { %3686 = vmatprep.subr.bf16.mxu0 %v5899_v53  ;;  %v5960_v53 = vld [vmem:[%s8069_s5 + $0xab8] ss:$28 sps:$4 sm:$0xff]  }
 0x287   :  { %3687 = vmatpush1.bf16.msra.mxu0 %v5897_v54  ;;  %v5963_v54 = vld [vmem:[%s8069_s5 + $0x8f8] ss:$28 sps:$4 sm:$0xff]  }
 0x288   :  { %3688 = vmatprep.subr.bf16.mxu0 %v5905_v55  ;;  %v1037_v55 = vadd.f32 %v6934_v30, %v616_v46  ;;  %v5969_v30 = vld [vmem:[%s8069_s5 + $0x8c0] ss:$28 sps:$4 sm:$0xff]   ;;  %v6019_v46 = vld [vmem:[%s8069_s5 + $0x38c] ss:$28 sps:$4 sm:$0xff]  }
 0x28b   :  { %3689 = vmatpush1.bf16.msra.mxu0 %v5903_v56 }
 0x28c   :  { %3690 = vmatprep.subr.bf16.mxu0 %v5911_v57  ;;  %v5968_v57 = vld [vmem:[%s8069_s5 + $0xa84] ss:$28 sps:$4 sm:$0xff]  }
 0x28f   :  { %3691 = vmatpush1.bf16.msra.mxu0 %v5909_v59 }
 0x290   :  { %v995_v2 = vpop.f32.mrf.mxu1  ;;  %3692 = vmatprep.subr.bf16.mxu0 %v5917_v61 }
 0x291   :  { %v996_v4 = vadd.f32 %v995_v2, %v608_v62  ;;  %v5966_v62 = vld [vmem:[%s8069_s5 + $0xa80] ss:$28 sps:$4 sm:$0xff]  }
 0x292   :  { %v997_v5 = vpop.f32.mrf.mxu1 }
 0x293   :  { %v998_v6 = vadd.f32 %v997_v5, %v612_v63  ;;  %3693 = vmatpush1.bf16.msra.mxu0 %v5915_v1  ;;  %v1085_v8 = vmax.f32 %v996_v4, 0.0  ;;  %v1087_v63 = vmax.f32 %v1037_v55, 0.0  ;;  %v5977_v4 = vld [vmem:[%s8069_s5 + $0x514] ss:$28 sps:$4 sm:$0xff]  }
 0x294   :  { %v999_v9 = vpop.f32.mrf.mxu1  ;;  %3694 = vmatprep.subr.bf16.mxu0 %v5923_v3  ;;  %v5974_v3 = vld [vmem:[%s8069_s5 + $0x194] ss:$28 sps:$4 sm:$0xff]  }
 0x295   :  { %v1086_v11 = vmax.f32 %v998_v6, 0.0  ;;  %v7009_v16 = vpack.c.bf16 %v1085_v8, %v1085_v8  ;;  %v5972_v6 = vld [vmem:[%s8069_s5 + $0x190] ss:$28 sps:$4 sm:$0xff]  }
 0x296   :  { %v1000_v12 = vpop.f32.mrf.mxu1  ;;  %v5975_v9 = vld [vmem:[%s8069_s5 + $0x510] ss:$28 sps:$4 sm:$0xff]  }
 0x297   :  { %v7001_v13 = vpack.c.bf16 %v1086_v11, %v1086_v11  ;;  %3695 = vmatpush1.bf16.msra.mxu0 %v5921_v7  ;;  %v7116_v7 = vpack.c.bf16 %v1087_v63, %v1087_v63  ;;  %v5983_v11 = vld [vmem:[%s8069_s5 + $0x4dc] ss:$28 sps:$4 sm:$0xff]   ;;  %v6023_v55 = vld [vmem:[%s8069_s5 + $0x6d0] ss:$28 sps:$4 sm:$0xff]  }
 0x298   :  { %3696 = vmatprep.subr.bf16.mxu0 %v5929_v10  ;;  %v5980_v10 = vld [vmem:[%s8069_s5 + $0x15c] ss:$28 sps:$4 sm:$0xff]  }
 0x299   :  { %3671 = vmatprep.mubr.bf16.mxu1 %v7001_v13  ;;  %v5978_v12 = vld [vmem:[%s8069_s5 + $0x158] ss:$28 sps:$4 sm:$0xff]   ;;  %v6035_v63 = vld [vmem:[%s8069_s5 + $0x660] ss:$28 sps:$4 sm:$0xff]  }
 0x29a   :  { %3672 = vmatmul.mubr.bf16.vlgmr.msra.gmra.mxu1 %v7009_v16 }
 0x29b   :  { %3722 = vmatpush1.bf16.msra.mxu1 %v5924_v0  ;;  %3697 = vmatpush2.bf16.msra.mxu0 %v5927_v14  ;;  %v5981_v0 = vld [vmem:[%s8069_s5 + $0x4d8] ss:$28 sps:$4 sm:$0xff]   ;;  %v5986_v14 = vld [vmem:[%s8069_s5 + $0x124] ss:$28 sps:$4 sm:$0xff]  }
 0x29c   :  { %3723 = vmatprep.subr.bf16.mxu1 %v5932_v17  ;;  %3698 = vmatprep.subr.bf16.mxu0 %v5935_v18  ;;  %v5989_v17 = vld [vmem:[%s8069_s5 + $0x4a4] ss:$28 sps:$4 sm:$0xff]  }
 0x29d   :  { %3753 = vmatprep.mubr.bf16.mxu1 %v6470_v39  ;;  %v5984_v18 = vld [vmem:[%s8069_s5 + $0x120] ss:$28 sps:$4 sm:$0xff]  }
 0x29f   :  { %3724 = vmatpush1.bf16.msra.mxu1 %v5930_v19  ;;  %3699 = vmatpush2.bf16.msra.mxu0 %v5933_v20  ;;  %v5987_v19 = vld [vmem:[%s8069_s5 + $0x4a0] ss:$28 sps:$4 sm:$0xff]   ;;  %v5992_v20 = vld [vmem:[%s8069_s5 + $0xec] ss:$28 sps:$4 sm:$0xff]  }
 0x2a0   :  { %3725 = vmatprep.subr.bf16.mxu1 %v5938_v21  ;;  %3700 = vmatprep.subr.bf16.mxu0 %v5941_v28  ;;  %v5995_v21 = vld [vmem:[%s8069_s5 + $0x46c] ss:$28 sps:$4 sm:$0xff]  }
 0x2a1   :  { %v5990_v28 = vld [vmem:[%s8069_s5 + $0xe8] ss:$28 sps:$4 sm:$0xff]  }
 0x2a3   :  { %3726 = vmatpush1.bf16.msra.mxu1 %v5936_v49  ;;  %3701 = vmatpush2.bf16.msra.mxu0 %v5939_v23  ;;  %v5993_v49 = vld [vmem:[%s8069_s5 + $0x468] ss:$28 sps:$4 sm:$0xff]   ;;  %v5998_v23 = vld [vmem:[%s8069_s5 + $0xb4] ss:$28 sps:$4 sm:$0xff]  }
 0x2a4   :  { %3727 = vmatprep.subr.bf16.mxu1 %v5944_v29  ;;  %3702 = vmatprep.subr.bf16.mxu0 %v5947_v31  ;;  %v6001_v29 = vld [vmem:[%s8069_s5 + $0x434] ss:$28 sps:$4 sm:$0xff]  }
 0x2a5   :  { %v5996_v31 = vld [vmem:[%s8069_s5 + $0xb0] ss:$28 sps:$4 sm:$0xff]  }
 0x2a7   :  { %3728 = vmatpush1.bf16.msra.mxu1 %v5942_v33  ;;  %3703 = vmatpush2.bf16.msra.mxu0 %v5945_v34  ;;  %v5999_v33 = vld [vmem:[%s8069_s5 + $0x430] ss:$28 sps:$4 sm:$0xff]   ;;  %v6004_v34 = vld [vmem:[%s8069_s5 + $0x7c] ss:$28 sps:$4 sm:$0xff]  }
 0x2a8   :  { %3729 = vmatprep.subr.bf16.mxu1 %v5950_v35  ;;  %3704 = vmatprep.subr.bf16.mxu0 %v5953_v36  ;;  %v6007_v35 = vld [vmem:[%s8069_s5 + $0x3fc] ss:$28 sps:$4 sm:$0xff]  }
 0x2a9   :  { %v6002_v36 = vld [vmem:[%s8069_s5 + $0x78] ss:$28 sps:$4 sm:$0xff]  }
 0x2ab   :  { %3730 = vmatpush1.bf16.msra.mxu1 %v5948_v37  ;;  %3705 = vmatpush2.bf16.msra.mxu0 %v5951_v38  ;;  %v6005_v37 = vld [vmem:[%s8069_s5 + $0x3f8] ss:$28 sps:$4 sm:$0xff]   ;;  %v6010_v38 = vld [vmem:[%s8069_s5 + $0x44] ss:$28 sps:$4 sm:$0xff]  }
 0x2ac   :  { %3731 = vmatprep.subr.bf16.mxu1 %v5956_v15  ;;  %3706 = vmatprep.subr.bf16.mxu0 %v5959_v41  ;;  %v6013_v15 = vld [vmem:[%s8069_s5 + $0x3c4] ss:$28 sps:$4 sm:$0xff]  }
 0x2ad   :  { %v6008_v41 = vld [vmem:[%s8069_s5 + $0x40] ss:$28 sps:$4 sm:$0xff]  }
 0x2af   :  { %3732 = vmatpush1.bf16.msra.mxu1 %v5954_v43  ;;  %3707 = vmatpush2.bf16.msra.mxu0 %v5957_v44  ;;  %v6011_v43 = vld [vmem:[%s8069_s5 + $0x3c0] ss:$28 sps:$4 sm:$0xff]   ;;  %v6016_v44 = vld [vmem:[%s8069_s5 + $0xc] ss:$28 sps:$4 sm:$0xff]  }
 0x2b0   :  { %v1077_v56 = vpop.f32.mrf.mxu1  ;;  %3733 = vmatprep.subr.bf16.mxu1 %v5962_v50  ;;  %3708 = vmatprep.subr.bf16.mxu0 %v5965_v51  ;;  %v6014_v50 = vld [vmem:[%s8069_s5 + $0x8] ss:$28 sps:$4 sm:$0xff]  }
 0x2b1   :  { %v1078_v59 = vadd.f32 %v1077_v56, %v624_v52  ;;  %v6017_v51 = vld [vmem:[%s8069_s5 + $0x388] ss:$28 sps:$4 sm:$0xff]   ;;  %v6022_v52 = vld [vmem:[%s8069_s5 + $0x354] ss:$28 sps:$4 sm:$0xff]   ;;  %v6028_v56 = vld [vmem:[%s8069_s5 + $0x31c] ss:$28 sps:$4 sm:$0xff]  }
 0x2b2   :  { %v5655_v61 = vpop.f32.mrf.mxu1 }
 0x2b3   :  { %3734 = vmatpush1.bf16.msra.mxu1 %v5960_v53  ;;  %3709 = vmatpush2.bf16.msra.mxu0 %v5963_v54  ;;  %v1089_v1 = vmax.f32 %v1078_v59, 0.0  ;;  %v6025_v53 = vld [vmem:[%s8069_s5 + $0x6d4] ss:$28 sps:$4 sm:$0xff]   ;;  %v6034_v61 = vld [vmem:[%s8069_s5 + $0x2e4] ss:$28 sps:$4 sm:$0xff]  }
 0x2b4   :  { %v1080_v2 = vpop.f32.mrf.mxu1  ;;  %3735 = vmatprep.subr.bf16.mxu1 %v5968_v57  ;;  %3710 = vmatprep.subr.bf16.mxu0 %v5971_v47  ;;  %v6020_v54 = vld [vmem:[%s8069_s5 + $0x350] ss:$28 sps:$4 sm:$0xff]   ;;  %v6031_v57 = vld [vmem:[%s8069_s5 + $0x69c] ss:$28 sps:$4 sm:$0xff]  }
 0x2b5   :  { %v7118_v8 = vpack.c.bf16 %v1089_v1, %v1089_v1  ;;  %v6026_v47 = vld [vmem:[%s8069_s5 + $0x318] ss:$28 sps:$4 sm:$0xff]   ;;  %v6040_v1 = vld [vmem:[%s8069_s5 + $0x2ac] ss:$28 sps:$4 sm:$0xff]  }
 0x2b6   :  { %v5656_v5 = vpop.f32.mrf.mxu1  ;;  %v6029_v59 = vld [vmem:[%s8069_s5 + $0x698] ss:$28 sps:$4 sm:$0xff]   ;;  %v6043_v2 = vld [vmem:[%s8069_s5 + $0x62c] ss:$28 sps:$4 sm:$0xff]  }
 0x2b7   :  { %3736 = vmatpush1.bf16.msra.mxu1 %v5966_v62  ;;  %3711 = vmatpush2.bf16.msra.mxu0 %v5969_v30  ;;  %v6037_v62 = vld [vmem:[%s8069_s5 + $0x664] ss:$28 sps:$4 sm:$0xff]   ;;  %v6046_v5 = vld [vmem:[%s8069_s5 + $0x274] ss:$28 sps:$4 sm:$0xff]  }
 0x2b8   :  { %3762 = vmatprep.subr.bf16.mxu1 %v5974_v3  ;;  %3803 = vmatprep.subr.bf16.mxu0 %v5977_v4  ;;  %v6032_v30 = vld [vmem:[%s8069_s5 + $0x2e0] ss:$28 sps:$4 sm:$0xff]   ;;  %v6038_v3 = vld [vmem:[%s8069_s5 + $0x2a8] ss:$28 sps:$4 sm:$0xff]  }
 0x2b9   :  { %v6041_v4 = vld [vmem:[%s8069_s5 + $0x628] ss:$28 sps:$4 sm:$0xff]  }
 0x2ba   :  { %3754 = vmatmul.mubr.bf16.vlgmr.msra.gmra.mxu1 %v7118_v8  ;;  %3713 = vmatmul.mubr.bf16.vlgmr.msra.gmra.mxu0 %v7116_v7 }
 0x2bb   :  { %3763 = vmatpush1.bf16.msra.mxu1 %v5972_v6  ;;  %3794 = vmatprep.mubr.bf16.mxu1 %v6936_v32  ;;  %v6049_v6 = vld [vmem:[%s8069_s5 + $0x5f4] ss:$28 sps:$4 sm:$0xff]  }
 0x2bc   :  { %3804 = vmatpush1.bf16.msra.mxu0 %v5975_v9  ;;  %3835 = vmatprep.mubr.bf16.mxu0 %v7001_v13  ;;  %v6044_v9 = vld [vmem:[%s8069_s5 + $0x270] ss:$28 sps:$4 sm:$0xff]  }
 0x2bd   :  { %3764 = vmatprep.subr.bf16.mxu1 %v5980_v10  ;;  %3805 = vmatprep.subr.bf16.mxu0 %v5983_v11  ;;  %v6047_v10 = vld [vmem:[%s8069_s5 + $0x5f0] ss:$28 sps:$4 sm:$0xff]   ;;  %v6052_v11 = vld [vmem:[%s8069_s5 + $0x23c] ss:$28 sps:$4 sm:$0xff]  }
 0x2bf   :  { %3765 = vmatpush1.bf16.msra.mxu1 %v5978_v12  ;;  %v6055_v12 = vld [vmem:[%s8069_s5 + $0x5bc] ss:$28 sps:$4 sm:$0xff]  }
 0x2c0   :  { %3806 = vmatpush1.bf16.msra.mxu0 %v5981_v0  ;;  %3766 = vmatprep.subr.bf16.mxu1 %v5986_v14  ;;  %v6050_v0 = vld [vmem:[%s8069_s5 + $0x238] ss:$28 sps:$4 sm:$0xff]  }
 0x2c1   :  { %3807 = vmatprep.subr.bf16.mxu0 %v5989_v17  ;;  %v6053_v14 = vld [vmem:[%s8069_s5 + $0x5b8] ss:$28 sps:$4 sm:$0xff]   ;;  %v6058_v17 = vld [vmem:[%s8069_s5 + $0x204] ss:$28 sps:$4 sm:$0xff]  }
 0x2c3   :  { %3767 = vmatpush1.bf16.msra.mxu1 %v5984_v18  ;;  %v6061_v18 = vld [vmem:[%s8069_s5 + $0x584] ss:$28 sps:$4 sm:$0xff]  }
 0x2c4   :  { %3808 = vmatpush1.bf16.msra.mxu0 %v5987_v19  ;;  %3768 = vmatprep.subr.bf16.mxu1 %v5992_v20  ;;  %v6056_v19 = vld [vmem:[%s8069_s5 + $0x200] ss:$28 sps:$4 sm:$0xff]  }
 0x2c5   :  { %3809 = vmatprep.subr.bf16.mxu0 %v5995_v21  ;;  %v6059_v20 = vld [vmem:[%s8069_s5 + $0x580] ss:$28 sps:$4 sm:$0xff]   ;;  %v6064_v21 = vld [vmem:[%s8069_s5 + $0x1cc] ss:$28 sps:$4 sm:$0xff]  }
 0x2c7   :  { %3769 = vmatpush1.bf16.msra.mxu1 %v5990_v28  ;;  %v6067_v28 = vld [vmem:[%s8069_s5 + $0x54c] ss:$28 sps:$4 sm:$0xff]  }
 0x2c8   :  { %3810 = vmatpush1.bf16.msra.mxu0 %v5993_v49  ;;  %3770 = vmatprep.subr.bf16.mxu1 %v5998_v23  ;;  %v6062_v49 = vld [vmem:[%s8069_s5 + $0x1c8] ss:$28 sps:$4 sm:$0xff]  }
 0x2c9   :  { %3811 = vmatprep.subr.bf16.mxu0 %v6001_v29  ;;  %v6065_v23 = vld [vmem:[%s8069_s5 + $0x548] ss:$28 sps:$4 sm:$0xff]   ;;  %v6070_v29 = vld [vmem:[%s8069_s5 + $0x894] ss:$28 sps:$4 sm:$0xff]  }
 0x2cb   :  { %3771 = vmatpush1.bf16.msra.mxu1 %v5996_v31  ;;  %v6073_v31 = vld [vmem:[%s8069_s5 + $0xc14] ss:$28 sps:$4 sm:$0xff]  }
 0x2cc   :  { %3812 = vmatpush1.bf16.msra.mxu0 %v5999_v33  ;;  %3772 = vmatprep.subr.bf16.mxu1 %v6004_v34  ;;  %v6068_v33 = vld [vmem:[%s8069_s5 + $0x890] ss:$28 sps:$4 sm:$0xff]  }
 0x2cd   :  { %3813 = vmatprep.subr.bf16.mxu0 %v6007_v35  ;;  %v6071_v34 = vld [vmem:[%s8069_s5 + $0xc10] ss:$28 sps:$4 sm:$0xff]   ;;  %v6076_v35 = vld [vmem:[%s8069_s5 + $0x85c] ss:$28 sps:$4 sm:$0xff]  }
 0x2cf   :  { %3773 = vmatpush1.bf16.msra.mxu1 %v6002_v36  ;;  %v6079_v36 = vld [vmem:[%s8069_s5 + $0xbdc] ss:$28 sps:$4 sm:$0xff]  }
 0x2d0   :  { %3814 = vmatpush1.bf16.msra.mxu0 %v6005_v37  ;;  %3774 = vmatprep.subr.bf16.mxu1 %v6010_v38  ;;  %v6074_v37 = vld [vmem:[%s8069_s5 + $0x858] ss:$28 sps:$4 sm:$0xff]  }
 0x2d1   :  { %3815 = vmatprep.subr.bf16.mxu0 %v6013_v15  ;;  %v6077_v38 = vld [vmem:[%s8069_s5 + $0xbd8] ss:$28 sps:$4 sm:$0xff]   ;;  %v6082_v15 = vld [vmem:[%s8069_s5 + $0x824] ss:$28 sps:$4 sm:$0xff]  }
 0x2d3   :  { %3775 = vmatpush1.bf16.msra.mxu1 %v6008_v41  ;;  %v6085_v41 = vld [vmem:[%s8069_s5 + $0xba4] ss:$28 sps:$4 sm:$0xff]  }
 0x2d4   :  { %3816 = vmatpush1.bf16.msra.mxu0 %v6011_v43  ;;  %3776 = vmatprep.subr.bf16.mxu1 %v6016_v44  ;;  %v6080_v43 = vld [vmem:[%s8069_s5 + $0x820] ss:$28 sps:$4 sm:$0xff]  }
 0x2d5   :  { %3817 = vmatprep.subr.bf16.mxu0 %v6019_v46  ;;  %v6083_v44 = vld [vmem:[%s8069_s5 + $0xba0] ss:$28 sps:$4 sm:$0xff]   ;;  %v6088_v46 = vld [vmem:[%s8069_s5 + $0x7ec] ss:$28 sps:$4 sm:$0xff]  }
 0x2d7   :  { %3777 = vmatpush1.bf16.msra.mxu1 %v6014_v50  ;;  %v6091_v50 = vld [vmem:[%s8069_s5 + $0xb6c] ss:$28 sps:$4 sm:$0xff]  }
 0x2d8   :  { %3818 = vmatpush1.bf16.msra.mxu0 %v6017_v51  ;;  %3778 = vmatprep.subr.bf16.mxu1 %v6022_v52  ;;  %v6086_v51 = vld [vmem:[%s8069_s5 + $0x7e8] ss:$28 sps:$4 sm:$0xff]  }
 0x2d9   :  { %3819 = vmatprep.subr.bf16.mxu0 %v6025_v53  ;;  %v6089_v52 = vld [vmem:[%s8069_s5 + $0xb68] ss:$28 sps:$4 sm:$0xff]   ;;  %v6094_v53 = vld [vmem:[%s8069_s5 + $0x7b4] ss:$28 sps:$4 sm:$0xff]  }
 0x2db   :  { %3779 = vmatpush2.bf16.msra.mxu1 %v6020_v54  ;;  %v6097_v54 = vld [vmem:[%s8069_s5 + $0xb34] ss:$28 sps:$4 sm:$0xff]  }
 0x2dc   :  { %3820 = vmatpush2.bf16.msra.mxu0 %v6023_v55  ;;  %3780 = vmatprep.subr.bf16.mxu1 %v6028_v56  ;;  %v6092_v55 = vld [vmem:[%s8069_s5 + $0x7b0] ss:$28 sps:$4 sm:$0xff]  }
 0x2dd   :  { %3821 = vmatprep.subr.bf16.mxu0 %v6031_v57  ;;  %v6095_v56 = vld [vmem:[%s8069_s5 + $0xb30] ss:$28 sps:$4 sm:$0xff]   ;;  %v6100_v57 = vld [vmem:[%s8069_s5 + $0x77c] ss:$28 sps:$4 sm:$0xff]  }
 0x2df   :  { %3781 = vmatpush2.bf16.msra.mxu1 %v6026_v47  ;;  %v6103_v47 = vld [vmem:[%s8069_s5 + $0xafc] ss:$28 sps:$4 sm:$0xff]  }
 0x2e0   :  { %3822 = vmatpush2.bf16.msra.mxu0 %v6029_v59  ;;  %3782 = vmatprep.subr.bf16.mxu1 %v6034_v61  ;;  %v6098_v59 = vld [vmem:[%s8069_s5 + $0x778] ss:$28 sps:$4 sm:$0xff]  }
 0x2e1   :  { %3823 = vmatprep.subr.bf16.mxu0 %v6037_v62  ;;  %v6101_v61 = vld [vmem:[%s8069_s5 + $0xaf8] ss:$28 sps:$4 sm:$0xff]   ;;  %v6106_v62 = vld [vmem:[%s8069_s5 + $0x744] ss:$28 sps:$4 sm:$0xff]  }
 0x2e3   :  { %3783 = vmatpush2.bf16.msra.mxu1 %v6032_v30  ;;  %v6109_v30 = vld [vmem:[%s8069_s5 + $0xac4] ss:$28 sps:$4 sm:$0xff]  }
 0x2e4   :  { %3824 = vmatpush2.bf16.msra.mxu0 %v6035_v63  ;;  %3784 = vmatprep.subr.bf16.mxu1 %v6040_v1  ;;  %v6104_v63 = vld [vmem:[%s8069_s5 + $0x740] ss:$28 sps:$4 sm:$0xff]  }
 0x2e5   :  { %3825 = vmatprep.subr.bf16.mxu0 %v6043_v2  ;;  %v6107_v1 = vld [vmem:[%s8069_s5 + $0xac0] ss:$28 sps:$4 sm:$0xff]   ;;  %v6112_v2 = vld [vmem:[%s8069_s5 + $0x70c] ss:$28 sps:$4 sm:$0xff]  }
 0x2e7   :  { %3785 = vmatpush2.bf16.msra.mxu1 %v6038_v3  ;;  %v6115_v3 = vld [vmem:[%s8069_s5 + $0xa8c] ss:$28 sps:$4 sm:$0xff]  }
 0x2e8   :  { %3826 = vmatpush2.bf16.msra.mxu0 %v6041_v4  ;;  %3786 = vmatprep.subr.bf16.mxu1 %v6046_v5  ;;  %v6110_v4 = vld [vmem:[%s8069_s5 + $0x708] ss:$28 sps:$4 sm:$0xff]  }
 0x2e9   :  { %3827 = vmatprep.subr.bf16.mxu0 %v6049_v6  ;;  %v6113_v5 = vld [vmem:[%s8069_s5 + $0xa88] ss:$28 sps:$4 sm:$0xff]   ;;  %v6118_v6 = vld [vmem:[%s8069_s5 + $0xa54] ss:$28 sps:$4 sm:$0xff]  }
 0x2eb   :  { %3787 = vmatpush2.bf16.msra.mxu1 %v6044_v9  ;;  %v6121_v9 = vld [vmem:[%s8069_s5 + $0x19c] ss:$28 sps:$4 sm:$0xff]  }
 0x2ec   :  { %3828 = vmatpush2.bf16.msra.mxu0 %v6047_v10  ;;  %3788 = vmatprep.subr.bf16.mxu1 %v6052_v11  ;;  %v6116_v10 = vld [vmem:[%s8069_s5 + $0xa50] ss:$28 sps:$4 sm:$0xff]   ;;  %v6119_v11 = vld [vmem:[%s8069_s5 + $0x198] ss:$28 sps:$4 sm:$0xff]  }
 0x2ed   :  { %3829 = vmatprep.subr.bf16.mxu0 %v6055_v12  ;;  %v6124_v12 = vld [vmem:[%s8069_s5 + $0xa1c] ss:$28 sps:$4 sm:$0xff]  }
 0x2ef   :  { %3789 = vmatpush2.bf16.msra.mxu1 %v6050_v0  ;;  %v6127_v0 = vld [vmem:[%s8069_s5 + $0x164] ss:$28 sps:$4 sm:$0xff]  }
 0x2f0   :  { %3830 = vmatpush2.bf16.msra.mxu0 %v6053_v14  ;;  %3790 = vmatprep.subr.bf16.mxu1 %v6058_v17  ;;  %v6122_v14 = vld [vmem:[%s8069_s5 + $0xa18] ss:$28 sps:$4 sm:$0xff]   ;;  %v6125_v17 = vld [vmem:[%s8069_s5 + $0x160] ss:$28 sps:$4 sm:$0xff]  }
 0x2f1   :  { %3831 = vmatprep.subr.bf16.mxu0 %v6061_v18  ;;  %v6130_v18 = vld [vmem:[%s8069_s5 + $0x9e4] ss:$28 sps:$4 sm:$0xff]  }
 0x2f3   :  { %3791 = vmatpush2.bf16.msra.mxu1 %v6056_v19  ;;  %v6133_v19 = vld [vmem:[%s8069_s5 + $0x12c] ss:$28 sps:$4 sm:$0xff]  }
 0x2f4   :  { %3832 = vmatpush2.bf16.msra.mxu0 %v6059_v20  ;;  %3792 = vmatprep.subr.bf16.mxu1 %v6064_v21  ;;  %v6128_v20 = vld [vmem:[%s8069_s5 + $0x9e0] ss:$28 sps:$4 sm:$0xff]   ;;  %v6131_v21 = vld [vmem:[%s8069_s5 + $0x128] ss:$28 sps:$4 sm:$0xff]  }
 0x2f5   :  { %3833 = vmatprep.subr.bf16.mxu0 %v6067_v28  ;;  %v6136_v28 = vld [vmem:[%s8069_s5 + $0x9ac] ss:$28 sps:$4 sm:$0xff]  }
 0x2f7   :  { %3793 = vmatpush2.bf16.msra.mxu1 %v6062_v49  ;;  %v6139_v49 = vld [vmem:[%s8069_s5 + $0xf4] ss:$28 sps:$4 sm:$0xff]  }
 0x2f8   :  { %3834 = vmatpush2.bf16.msra.mxu0 %v6065_v23  ;;  %3844 = vmatprep.subr.bf16.mxu1 %v6070_v29  ;;  %v6134_v23 = vld [vmem:[%s8069_s5 + $0x9a8] ss:$28 sps:$4 sm:$0xff]   ;;  %v6137_v29 = vld [vmem:[%s8069_s5 + $0xf0] ss:$28 sps:$4 sm:$0xff]  }
 0x2f9   :  { %3885 = vmatprep.subr.bf16.mxu0 %v6073_v31  ;;  %v6142_v31 = vld [vmem:[%s8069_s5 + $0x974] ss:$28 sps:$4 sm:$0xff]  }
 0x2fa   :  { %3795 = vmatmul.mubr.bf16.vlgmr.msra.gmra.mxu1 %v6941_v45 }
 0x2fb   :  { %3836 = vmatmul.mubr.bf16.vlgmr.msra.gmra.mxu0 %v7009_v16  ;;  %3845 = vmatpush1.bf16.msra.mxu1 %v6068_v33  ;;  %v6145_v33 = vld [vmem:[%s8069_s5 + $0xbc] ss:$28 sps:$4 sm:$0xff]  }
 0x2fc   :  { %3876 = vmatprep.mubr.bf16.mxu1 %v6946_v48  ;;  %3886 = vmatpush1.bf16.msra.mxu0 %v6071_v34  ;;  %v6140_v34 = vld [vmem:[%s8069_s5 + $0x970] ss:$28 sps:$4 sm:$0xff]  }
 0x2fd   :  { %3846 = vmatprep.subr.bf16.mxu1 %v6076_v35  ;;  %3887 = vmatprep.subr.bf16.mxu0 %v6079_v36  ;;  %v6143_v35 = vld [vmem:[%s8069_s5 + $0xb8] ss:$28 sps:$4 sm:$0xff]  }
 0x2fe   :  { %3917 = vmatprep.mubr.bf16.mxu0 %v6470_v39  ;;  %v6148_v36 = vld [vmem:[%s8069_s5 + $0x93c] ss:$28 sps:$4 sm:$0xff]  }
 0x2ff   :  { %3847 = vmatpush1.bf16.msra.mxu1 %v6074_v37  ;;  %v6151_v37 = vld [vmem:[%s8069_s5 + $0x84] ss:$28 sps:$4 sm:$0xff]  }
 0x300   :  { %3888 = vmatpush1.bf16.msra.mxu0 %v6077_v38  ;;  %3848 = vmatprep.subr.bf16.mxu1 %v6082_v15  ;;  %v6146_v38 = vld [vmem:[%s8069_s5 + $0x938] ss:$28 sps:$4 sm:$0xff]   ;;  %v6149_v15 = vld [vmem:[%s8069_s5 + $0x80] ss:$28 sps:$4 sm:$0xff]  }
 0x301   :  { %3889 = vmatprep.subr.bf16.mxu0 %v6085_v41  ;;  %v6154_v41 = vld [vmem:[%s8069_s5 + $0x904] ss:$28 sps:$4 sm:$0xff]  }
 0x303   :  { %3849 = vmatpush1.bf16.msra.mxu1 %v6080_v43  ;;  %v6157_v43 = vld [vmem:[%s8069_s5 + $0x4c] ss:$28 sps:$4 sm:$0xff]  }
 0x304   :  { %3890 = vmatpush1.bf16.msra.mxu0 %v6083_v44  ;;  %3850 = vmatprep.subr.bf16.mxu1 %v6088_v46  ;;  %v6152_v44 = vld [vmem:[%s8069_s5 + $0x900] ss:$28 sps:$4 sm:$0xff]   ;;  %v6155_v46 = vld [vmem:[%s8069_s5 + $0x48] ss:$28 sps:$4 sm:$0xff]  }
 0x305   :  { %3891 = vmatprep.subr.bf16.mxu0 %v6091_v50  ;;  %v6160_v50 = vld [vmem:[%s8069_s5 + $0x8cc] ss:$28 sps:$4 sm:$0xff]  }
 0x307   :  { %3851 = vmatpush1.bf16.msra.mxu1 %v6086_v51  ;;  %v6163_v51 = vld [vmem:[%s8069_s5 + $0x14] ss:$28 sps:$4 sm:$0xff]  }
 0x308   :  { %3892 = vmatpush1.bf16.msra.mxu0 %v6089_v52  ;;  %3852 = vmatprep.subr.bf16.mxu1 %v6094_v53  ;;  %v6158_v52 = vld [vmem:[%s8069_s5 + $0x8c8] ss:$28 sps:$4 sm:$0xff]   ;;  %v6161_v53 = vld [vmem:[%s8069_s5 + $0x10] ss:$28 sps:$4 sm:$0xff]  }
 0x309   :  { %3893 = vmatprep.subr.bf16.mxu0 %v6097_v54  ;;  %v6166_v54 = vld [vmem:[%s8069_s5 + $0x51c] ss:$28 sps:$4 sm:$0xff]  }
 0x30b   :  { %3853 = vmatpush1.bf16.msra.mxu1 %v6092_v55  ;;  %v6169_v55 = vld [vmem:[%s8069_s5 + $0x35c] ss:$28 sps:$4 sm:$0xff]  }
 0x30c   :  { %3894 = vmatpush1.bf16.msra.mxu0 %v6095_v56  ;;  %3854 = vmatprep.subr.bf16.mxu1 %v6100_v57  ;;  %v6164_v56 = vld [vmem:[%s8069_s5 + $0x518] ss:$28 sps:$4 sm:$0xff]  }
 0x30d   :  { %3895 = vmatprep.subr.bf16.mxu0 %v6103_v47  ;;  %v6167_v57 = vld [vmem:[%s8069_s5 + $0x358] ss:$28 sps:$4 sm:$0xff]   ;;  %v6172_v47 = vld [vmem:[%s8069_s5 + $0x4e4] ss:$28 sps:$4 sm:$0xff]  }
 0x30f   :  { %3855 = vmatpush1.bf16.msra.mxu1 %v6098_v59  ;;  %v6175_v59 = vld [vmem:[%s8069_s5 + $0x324] ss:$28 sps:$4 sm:$0xff]  }
 0x310   :  { %3896 = vmatpush1.bf16.msra.mxu0 %v6101_v61  ;;  %3856 = vmatprep.subr.bf16.mxu1 %v6106_v62  ;;  %v6170_v62 = vld [vmem:[%s8069_s5 + $0x4e0] ss:$28 sps:$4 sm:$0xff]  }
 0x311   :  { %3897 = vmatprep.subr.bf16.mxu0 %v6109_v30 }
 0x313   :  { %3857 = vmatpush1.bf16.msra.mxu1 %v6104_v63  ;;  %v6173_v63 = vld [vmem:[%s8069_s5 + $0x320] ss:$28 sps:$4 sm:$0xff]  }
 0x314   :  { %3898 = vmatpush1.bf16.msra.mxu0 %v6107_v1  ;;  %3858 = vmatprep.subr.bf16.mxu1 %v6112_v2  ;;  %v6178_v1 = vld [vmem:[%s8069_s5 + $0x4ac] ss:$28 sps:$4 sm:$0xff]  }
 0x315   :  { %3899 = vmatprep.subr.bf16.mxu0 %v6115_v3  ;;  %v6181_v2 = vld [vmem:[%s8069_s5 + $0x2ec] ss:$28 sps:$4 sm:$0xff]  }
 0x317   :  { %3859 = vmatpush1.bf16.msra.mxu1 %v6110_v4  ;;  %v6176_v4 = vld [vmem:[%s8069_s5 + $0x4a8] ss:$28 sps:$4 sm:$0xff]  }
 0x318   :  { %3900 = vmatpush1.bf16.msra.mxu0 %v6113_v5  ;;  %3860 = vmatprep.subr.bf16.mxu1 %v6118_v6  ;;  %v6179_v6 = vld [vmem:[%s8069_s5 + $0x2e8] ss:$28 sps:$4 sm:$0xff]  }
 0x319   :  { %3926 = vmatprep.subr.bf16.mxu0 %v6121_v9  ;;  %v6184_v9 = vld [vmem:[%s8069_s5 + $0x474] ss:$28 sps:$4 sm:$0xff]  }
 0x31b   :  { %3861 = vmatpush2.bf16.msra.mxu1 %v6116_v10  ;;  %3918 = vmatmul.mubr.bf16.vlgmr.msra.gmra.mxu0 %v7118_v8  ;;  %v6187_v10 = vld [vmem:[%s8069_s5 + $0x2b4] ss:$28 sps:$4 sm:$0xff]  }
 0x31c   :  { %3927 = vmatpush1.bf16.msra.mxu0 %v6119_v11  ;;  %3958 = vmatprep.mubr.bf16.mxu0 %v6936_v32  ;;  %v6182_v11 = vld [vmem:[%s8069_s5 + $0x470] ss:$28 sps:$4 sm:$0xff]  }
 0x31d   :  { %3862 = vmatprep.subr.bf16.mxu1 %v6124_v12  ;;  %3928 = vmatprep.subr.bf16.mxu0 %v6127_v0  ;;  %v6185_v12 = vld [vmem:[%s8069_s5 + $0x2b0] ss:$28 sps:$4 sm:$0xff]   ;;  %v6190_v0 = vld [vmem:[%s8069_s5 + $0x43c] ss:$28 sps:$4 sm:$0xff]  }
 0x31f   :  { %3863 = vmatpush2.bf16.msra.mxu1 %v6122_v14  ;;  %v6193_v14 = vld [vmem:[%s8069_s5 + $0x27c] ss:$28 sps:$4 sm:$0xff]  }
 0x320   :  { %3929 = vmatpush1.bf16.msra.mxu0 %v6125_v17  ;;  %3864 = vmatprep.subr.bf16.mxu1 %v6130_v18  ;;  %v6188_v17 = vld [vmem:[%s8069_s5 + $0x438] ss:$28 sps:$4 sm:$0xff]  }
 0x321   :  { %3930 = vmatprep.subr.bf16.mxu0 %v6133_v19  ;;  %v6191_v18 = vld [vmem:[%s8069_s5 + $0x278] ss:$28 sps:$4 sm:$0xff]   ;;  %v6196_v19 = vld [vmem:[%s8069_s5 + $0x404] ss:$28 sps:$4 sm:$0xff]  }
 0x323   :  { %3865 = vmatpush2.bf16.msra.mxu1 %v6128_v20  ;;  %v6199_v20 = vld [vmem:[%s8069_s5 + $0x244] ss:$28 sps:$4 sm:$0xff]  }
 0x324   :  { %3931 = vmatpush1.bf16.msra.mxu0 %v6131_v21  ;;  %3866 = vmatprep.subr.bf16.mxu1 %v6136_v28  ;;  %v6194_v21 = vld [vmem:[%s8069_s5 + $0x400] ss:$28 sps:$4 sm:$0xff]  }
 0x325   :  { %3932 = vmatprep.subr.bf16.mxu0 %v6139_v49  ;;  %v6197_v28 = vld [vmem:[%s8069_s5 + $0x240] ss:$28 sps:$4 sm:$0xff]   ;;  %v6202_v49 = vld [vmem:[%s8069_s5 + $0x3cc] ss:$28 sps:$4 sm:$0xff]  }
 0x327   :  { %3867 = vmatpush2.bf16.msra.mxu1 %v6134_v23  ;;  %v6205_v23 = vld [vmem:[%s8069_s5 + $0x20c] ss:$28 sps:$4 sm:$0xff]  }
 0x328   :  { %3933 = vmatpush1.bf16.msra.mxu0 %v6137_v29  ;;  %3868 = vmatprep.subr.bf16.mxu1 %v6142_v31  ;;  %v6200_v29 = vld [vmem:[%s8069_s5 + $0x3c8] ss:$28 sps:$4 sm:$0xff]  }
 0x329   :  { %3934 = vmatprep.subr.bf16.mxu0 %v6145_v33  ;;  %v6203_v31 = vld [vmem:[%s8069_s5 + $0x208] ss:$28 sps:$4 sm:$0xff]   ;;  %v6208_v33 = vld [vmem:[%s8069_s5 + $0x394] ss:$28 sps:$4 sm:$0xff]  }
 0x32b   :  { %3869 = vmatpush2.bf16.msra.mxu1 %v6140_v34  ;;  %v6211_v34 = vld [vmem:[%s8069_s5 + $0x1d4] ss:$28 sps:$4 sm:$0xff]  }
 0x32c   :  { %3935 = vmatpush1.bf16.msra.mxu0 %v6143_v35  ;;  %3870 = vmatprep.subr.bf16.mxu1 %v6148_v36  ;;  %v7604_v35 = vld [vmem:[%s8070_s6] sm:$0xff]  ;;  %v6206_v36 = vld [vmem:[%s8069_s5 + $0x390] ss:$28 sps:$4 sm:$0xff]  }
 0x32d   :  { %3936 = vmatprep.subr.bf16.mxu0 %v6151_v37  ;;  %v6209_v37 = vld [vmem:[%s8069_s5 + $0x1d0] ss:$28 sps:$4 sm:$0xff]  }
 0x32f   :  { %3871 = vmatpush2.bf16.msra.mxu1 %v6146_v38  ;;  %v6214_v38 = vld [vmem:[%s8069_s5 + $0x6dc] ss:$28 sps:$4 sm:$0xff]  }
 0x330   :  { %3937 = vmatpush1.bf16.msra.mxu0 %v6149_v15  ;;  %3872 = vmatprep.subr.bf16.mxu1 %v6154_v41  ;;  %v1550_v15 = vrot.slane %v7604_v35, %v599_v24  ;;  %v6217_v41 = vld [vmem:[%s8069_s5 + $0x89c] ss:$28 sps:$4 sm:$0xff]  }
 0x331   :  { %3938 = vmatprep.subr.bf16.mxu0 %v6157_v43  ;;  %v1554_v43 = vrot.slane %v7604_v35, %v603_v25  ;;  %v6215_v24 = vld [vmem:[%s8069_s5 + $0x898] ss:$28 sps:$4 sm:$0xff]   ;;  %v6223_v25 = vld [vmem:[%s8069_s5 + $0x864] ss:$28 sps:$4 sm:$0xff]  }
 0x333   :  { %3873 = vmatpush2.bf16.msra.mxu1 %v6152_v44  ;;  %v6212_v44 = vld [vmem:[%s8069_s5 + $0x6d8] ss:$28 sps:$4 sm:$0xff]  }
 0x334   :  { %3939 = vmatpush1.bf16.msra.mxu0 %v6155_v46  ;;  %3874 = vmatprep.subr.bf16.mxu1 %v6160_v50  ;;  %v6220_v50 = vld [vmem:[%s8069_s5 + $0x6a4] ss:$28 sps:$4 sm:$0xff]  }
 0x335   :  { %3940 = vmatprep.subr.bf16.mxu0 %v6163_v51 }
 0x337   :  { %3875 = vmatpush2.bf16.msra.mxu1 %v6158_v52 }
 0x338   :  { %3941 = vmatpush1.bf16.msra.mxu0 %v6161_v53  ;;  %3967 = vmatprep.subr.bf16.mxu1 %v6166_v54  ;;  %v6218_v54 = vld [vmem:[%s8069_s5 + $0x6a0] ss:$28 sps:$4 sm:$0xff]  }
 0x339   :  { %3942 = vmatprep.subr.bf16.mxu0 %v6169_v55 }
 0x33a   :  { %3877 = vmatmul.mubr.bf16.vlgmr.msra.gmra.mxu1 %v7116_v7  ;;  %v7524_v61 = vpop.f32.mrf.mxu0 }
 0x33b   :  { %3968 = vmatpush1.bf16.msra.mxu1 %v6164_v56  ;;  %3999 = vmatprep.mubr.bf16.mxu1 %v7001_v13  ;;  %v3633_v46 = vadd.f32 %v7524_v61, %v1550_v15  ;;  %v6221_v56 = vld [vmem:[%s8069_s5 + $0x860] ss:$28 sps:$4 sm:$0xff]  }
 0x33c   :  { %3943 = vmatpush2.bf16.msra.mxu0 %v6167_v57  ;;  %v7530_v30 = vpop.f32.mrf.mxu0  ;;  %3969 = vmatprep.subr.bf16.mxu1 %v6172_v47  ;;  %v6226_v57 = vld [vmem:[%s8069_s5 + $0x66c] ss:$28 sps:$4 sm:$0xff]  }
 0x33d   :  { %3944 = vmatprep.subr.bf16.mxu0 %v6175_v59  ;;  %v3635_v52 = vadd.f32 %v7530_v30, %v1554_v43  ;;  %v6229_v59 = vld [vmem:[%s8069_s5 + $0x82c] ss:$28 sps:$4 sm:$0xff]   ;;  %v6266_v43 = vld [vmem:[%s8069_s5 + $0xbe0] ss:$28 sps:$4 sm:$0xff]  }
 0x33e   :  { %v3636_v3 = vpop.f32.mrf.mxu0 }
 0x33f   :  { %3970 = vmatpush1.bf16.msra.mxu1 %v6170_v62  ;;  %v6224_v62 = vld [vmem:[%s8069_s5 + $0x668] ss:$28 sps:$4 sm:$0xff]   ;;  %v6230_v3 = vld [vmem:[%s8069_s5 + $0x630] ss:$28 sps:$4 sm:$0xff]  }
 0x340   :  { %3945 = vmatpush2.bf16.msra.mxu0 %v6173_v63  ;;  %v3637_v5 = vpop.f32.mrf.mxu0  ;;  %3971 = vmatprep.subr.bf16.mxu1 %v6178_v1  ;;  %v6227_v63 = vld [vmem:[%s8069_s5 + $0x828] ss:$28 sps:$4 sm:$0xff]   ;;  %v6232_v1 = vld [vmem:[%s8069_s5 + $0x634] ss:$28 sps:$4 sm:$0xff]  }
 0x341   :  { %3946 = vmatprep.subr.bf16.mxu0 %v6181_v2  ;;  %v6235_v2 = vld [vmem:[%s8069_s5 + $0x7f4] ss:$28 sps:$4 sm:$0xff]   ;;  %v6238_v5 = vld [vmem:[%s8069_s5 + $0x5fc] ss:$28 sps:$4 sm:$0xff]  }
 0x343   :  { %3972 = vmatpush1.bf16.msra.mxu1 %v6176_v4  ;;  %v6233_v4 = vld [vmem:[%s8069_s5 + $0x7f0] ss:$28 sps:$4 sm:$0xff]  }
 0x344   :  { %3947 = vmatpush2.bf16.msra.mxu0 %v6179_v6  ;;  %3973 = vmatprep.subr.bf16.mxu1 %v6184_v9  ;;  %v6241_v6 = vld [vmem:[%s8069_s5 + $0x7bc] ss:$28 sps:$4 sm:$0xff]  }
 0x345   :  { %3948 = vmatprep.subr.bf16.mxu0 %v6187_v10  ;;  %v6236_v9 = vld [vmem:[%s8069_s5 + $0x5f8] ss:$28 sps:$4 sm:$0xff]  }
 0x346   :  { %v6239_v10 = vld [vmem:[%s8069_s5 + $0x7b8] ss:$28 sps:$4 sm:$0xff]  }
 0x347   :  { %3974 = vmatpush1.bf16.msra.mxu1 %v6182_v11  ;;  %v6244_v11 = vld [vmem:[%s8069_s5 + $0x5c4] ss:$28 sps:$4 sm:$0xff]  }
 0x348   :  { %3949 = vmatpush2.bf16.msra.mxu0 %v6185_v12  ;;  %3975 = vmatprep.subr.bf16.mxu1 %v6190_v0  ;;  %v6247_v12 = vld [vmem:[%s8069_s5 + $0x784] ss:$28 sps:$4 sm:$0xff]  }
 0x349   :  { %3950 = vmatprep.subr.bf16.mxu0 %v6193_v14  ;;  %v6242_v0 = vld [vmem:[%s8069_s5 + $0x5c0] ss:$28 sps:$4 sm:$0xff]  }
 0x34a   :  { %v6245_v14 = vld [vmem:[%s8069_s5 + $0x780] ss:$28 sps:$4 sm:$0xff]  }
 0x34b   :  { %3976 = vmatpush1.bf16.msra.mxu1 %v6188_v17  ;;  %v6250_v17 = vld [vmem:[%s8069_s5 + $0x58c] ss:$28 sps:$4 sm:$0xff]  }
 0x34c   :  { %3951 = vmatpush2.bf16.msra.mxu0 %v6191_v18  ;;  %3977 = vmatprep.subr.bf16.mxu1 %v6196_v19  ;;  %v6253_v18 = vld [vmem:[%s8069_s5 + $0x74c] ss:$28 sps:$4 sm:$0xff]  }
 0x34d   :  { %3952 = vmatprep.subr.bf16.mxu0 %v6199_v20  ;;  %v6248_v19 = vld [vmem:[%s8069_s5 + $0x588] ss:$28 sps:$4 sm:$0xff]  }
 0x34e   :  { %v6251_v20 = vld [vmem:[%s8069_s5 + $0x748] ss:$28 sps:$4 sm:$0xff]  }
 0x34f   :  { %3978 = vmatpush1.bf16.msra.mxu1 %v6194_v21  ;;  %v6256_v21 = vld [vmem:[%s8069_s5 + $0x554] ss:$28 sps:$4 sm:$0xff]  }
 0x350   :  { %3953 = vmatpush2.bf16.msra.mxu0 %v6197_v28  ;;  %3979 = vmatprep.subr.bf16.mxu1 %v6202_v49  ;;  %v6259_v28 = vld [vmem:[%s8069_s5 + $0x714] ss:$28 sps:$4 sm:$0xff]  }
 0x351   :  { %3954 = vmatprep.subr.bf16.mxu0 %v6205_v23  ;;  %v6254_v49 = vld [vmem:[%s8069_s5 + $0x550] ss:$28 sps:$4 sm:$0xff]  }
 0x352   :  { %v6257_v23 = vld [vmem:[%s8069_s5 + $0x710] ss:$28 sps:$4 sm:$0xff]  }
 0x353   :  { %3980 = vmatpush1.bf16.msra.mxu1 %v6200_v29  ;;  %v6262_v29 = vld [vmem:[%s8069_s5 + $0xc1c] ss:$28 sps:$4 sm:$0xff]  }
 0x354   :  { %3955 = vmatpush2.bf16.msra.mxu0 %v6203_v31  ;;  %3981 = vmatprep.subr.bf16.mxu1 %v6208_v33  ;;  %v6265_v31 = vld [vmem:[%s8069_s5 + $0xa5c] ss:$28 sps:$4 sm:$0xff]  }
 0x355   :  { %3956 = vmatprep.subr.bf16.mxu0 %v6211_v34  ;;  %v6260_v33 = vld [vmem:[%s8069_s5 + $0xc18] ss:$28 sps:$4 sm:$0xff]  }
 0x356   :  { %v6263_v34 = vld [vmem:[%s8069_s5 + $0xa58] ss:$28 sps:$4 sm:$0xff]  }
 0x357   :  { %3982 = vmatpush1.bf16.msra.mxu1 %v6206_v36  ;;  %v6268_v36 = vld [vmem:[%s8069_s5 + $0xbe4] ss:$28 sps:$4 sm:$0xff]  }
 0x358   :  { %3957 = vmatpush2.bf16.msra.mxu0 %v6209_v37  ;;  %3983 = vmatprep.subr.bf16.mxu1 %v6214_v38  ;;  %v6271_v37 = vld [vmem:[%s8069_s5 + $0xa24] ss:$28 sps:$4 sm:$0xff]  }
 0x359   :  { %4008 = vmatprep.subr.bf16.mxu0 %v6217_v41 }
 0x35a   :  { %v3673_v51 = vpop.f32.mrf.mxu1 }
 0x35b   :  { %v7638_v53 = vadd.f32 %v3673_v51, %v3633_v46  ;;  %3959 = vmatmul.mubr.bf16.vlgmr.msra.gmra.mxu0 %v6941_v45  ;;  %3984 = vmatpush2.bf16.msra.mxu1 %v6212_v44  ;;  %v6269_v46 = vld [vmem:[%s8069_s5 + $0xa20] ss:$28 sps:$4 sm:$0xff]  }
 0x35c   :  { %4009 = vmatpush1.bf16.msra.mxu0 %v6215_v24  ;;  %4040 = vmatprep.mubr.bf16.mxu0 %v6946_v48  ;;  %v3675_v55 = vpop.f32.mrf.mxu1 }
 0x35d   :  { %v7651_v47 = vadd.f32 %v3675_v55, %v3635_v52  ;;  %3985 = vmatprep.subr.bf16.mxu1 %v6220_v50  ;;  %4010 = vmatprep.subr.bf16.mxu0 %v6223_v25  ;;  %v6274_v50 = vld [vmem:[%s8069_s5 + $0xbac] ss:$28 sps:$4 sm:$0xff]  }
 0x35e   :  { %v3677_v61 = vpop.f32.mrf.mxu1  ;;  %v6272_v55 = vld [vmem:[%s8069_s5 + $0xba8] ss:$28 sps:$4 sm:$0xff]  }
 0x35f   :  { %3986 = vmatpush2.bf16.msra.mxu1 %v6218_v54  ;;  %v6283_v61 = vld [vmem:[%s8069_s5 + $0x9b4] ss:$28 sps:$4 sm:$0xff]  }
 0x360   :  { %4011 = vmatpush1.bf16.msra.mxu0 %v6221_v56  ;;  %v3678_v30 = vpop.f32.mrf.mxu1  ;;  %3987 = vmatprep.subr.bf16.mxu1 %v6226_v57 }
 0x361   :  { %4012 = vmatprep.subr.bf16.mxu0 %v6229_v59  ;;  %v6280_v59 = vld [vmem:[%s8069_s5 + $0xb74] ss:$28 sps:$4 sm:$0xff]  }
 0x362   :  { %v6281_v30 = vld [vmem:[%s8069_s5 + $0x9b0] ss:$28 sps:$4 sm:$0xff]  }
 0x363   :  { %3988 = vmatpush2.bf16.msra.mxu1 %v6224_v62  ;;  %v6278_v62 = vld [vmem:[%s8069_s5 + $0xb70] ss:$28 sps:$4 sm:$0xff]  }
 0x364   :  { %4013 = vmatpush1.bf16.msra.mxu0 %v6227_v63  ;;  %3989 = vmatprep.subr.bf16.mxu1 %v6232_v1  ;;  %v6286_v63 = vld [vmem:[%s8069_s5 + $0xb3c] ss:$28 sps:$4 sm:$0xff]  }
 0x365   :  { %4014 = vmatprep.subr.bf16.mxu0 %v6235_v2  ;;  %v6289_v1 = vld [vmem:[%s8069_s5 + $0x97c] ss:$28 sps:$4 sm:$0xff]  }
 0x366   :  { %v6284_v2 = vld [vmem:[%s8069_s5 + $0xb38] ss:$28 sps:$4 sm:$0xff]  }
 0x367   :  { %3990 = vmatpush2.bf16.msra.mxu1 %v6230_v3  ;;  %v6287_v3 = vld [vmem:[%s8069_s5 + $0x978] ss:$28 sps:$4 sm:$0xff]  }
 0x368   :  { %4015 = vmatpush1.bf16.msra.mxu0 %v6233_v4  ;;  %3991 = vmatprep.subr.bf16.mxu1 %v6238_v5  ;;  %v6292_v4 = vld [vmem:[%s8069_s5 + $0xb04] ss:$28 sps:$4 sm:$0xff]  }
 0x369   :  { %4016 = vmatprep.subr.bf16.mxu0 %v6241_v6  ;;  %v6295_v5 = vld [vmem:[%s8069_s5 + $0x944] ss:$28 sps:$4 sm:$0xff]  }
 0x36a   :  { %v6290_v6 = vld [vmem:[%s8069_s5 + $0xb00] ss:$28 sps:$4 sm:$0xff]  }
 0x36b   :  { %3992 = vmatpush2.bf16.msra.mxu1 %v6236_v9  ;;  %v6293_v9 = vld [vmem:[%s8069_s5 + $0x940] ss:$28 sps:$4 sm:$0xff]  }
 0x36c   :  { %4017 = vmatpush1.bf16.msra.mxu0 %v6239_v10  ;;  %3993 = vmatprep.subr.bf16.mxu1 %v6244_v11  ;;  %v6298_v10 = vld [vmem:[%s8069_s5 + $0xacc] ss:$28 sps:$4 sm:$0xff]  }
 0x36d   :  { %4018 = vmatprep.subr.bf16.mxu0 %v6247_v12  ;;  %v6301_v11 = vld [vmem:[%s8069_s5 + $0x90c] ss:$28 sps:$4 sm:$0xff]  }
 0x36e   :  { %v6296_v12 = vld [vmem:[%s8069_s5 + $0xac8] ss:$28 sps:$4 sm:$0xff]  }
 0x36f   :  { %3994 = vmatpush2.bf16.msra.mxu1 %v6242_v0  ;;  %v6299_v0 = vld [vmem:[%s8069_s5 + $0x908] ss:$28 sps:$4 sm:$0xff]  }
 0x370   :  { %4019 = vmatpush1.bf16.msra.mxu0 %v6245_v14  ;;  %3995 = vmatprep.subr.bf16.mxu1 %v6250_v17  ;;  %v6304_v14 = vld [vmem:[%s8069_s5 + $0xa94] ss:$28 sps:$4 sm:$0xff]  }
 0x371   :  { %4020 = vmatprep.subr.bf16.mxu0 %v6253_v18  ;;  %v6307_v17 = vld [vmem:[%s8069_s5 + $0x8d4] ss:$28 sps:$4 sm:$0xff]  }
 0x372   :  { %v6302_v18 = vld [vmem:[%s8069_s5 + $0xa90] ss:$28 sps:$4 sm:$0xff]  }
 0x373   :  { %3996 = vmatpush2.bf16.msra.mxu1 %v6248_v19  ;;  %v6305_v19 = vld [vmem:[%s8069_s5 + $0x8d0] ss:$28 sps:$4 sm:$0xff]  }
 0x374   :  { %4021 = vmatpush1.bf16.msra.mxu0 %v6251_v20  ;;  %3997 = vmatprep.subr.bf16.mxu1 %v6256_v21  ;;  %v6308_v20 = vld [vmem:[%s8069_s5 + $0x360] ss:$28 sps:$4 sm:$0xff]  }
 0x375   :  { %4022 = vmatprep.subr.bf16.mxu0 %v6259_v28  ;;  %v6310_v21 = vld [vmem:[%s8069_s5 + $0x6e0] ss:$28 sps:$4 sm:$0xff]  }
 0x376   :  { %v6309_v28 = vld [vmem:[%s8069_s5 + $0x1a0] ss:$28 sps:$4 sm:$0xff]  }
 0x377   :  { %3998 = vmatpush2.bf16.msra.mxu1 %v6254_v49  ;;  %v6311_v49 = vld [vmem:[%s8069_s5 + $0x520] ss:$28 sps:$4 sm:$0xff]  }
 0x378   :  { %4023 = vmatpush1.bf16.msra.mxu0 %v6257_v23  ;;  %4049 = vmatprep.subr.bf16.mxu1 %v6262_v29  ;;  %v6312_v23 = vld [vmem:[%s8069_s5 + $0x328] ss:$28 sps:$4 sm:$0xff]  }
 0x379   :  { %4024 = vmatprep.subr.bf16.mxu0 %v6265_v31  ;;  %v6314_v29 = vld [vmem:[%s8069_s5 + $0x6a8] ss:$28 sps:$4 sm:$0xff]  }
 0x37a   :  { %v3755_v38 = vpop.f32.mrf.mxu1  ;;  %4000 = vmatmul.mubr.bf16.vlgmr.msra.gmra.mxu1 %v7009_v16  ;;  %v3714_v15 = vpop.f32.mrf.mxu0  ;;  %v6313_v31 = vld [vmem:[%s8069_s5 + $0x168] ss:$28 sps:$4 sm:$0xff]  }
 0x37b   :  { %v3715_v41 = vadd.f32 %v3714_v15, %v7638_v53  ;;  %4050 = vmatpush1.bf16.msra.mxu1 %v6260_v33  ;;  %4081 = vmatprep.mubr.bf16.mxu1 %v6470_v39  ;;  %v6277_v39 = vld [vmem:[%s8069_s5 + $0x9ec] ss:$28 sps:$4 sm:$0xff]   ;;  %v6321_v15 = vld [vmem:[%s8069_s5 + $0xf8] ss:$28 sps:$4 sm:$0xff]  }
 0x37c   :  { %v3757_v44 = vpop.f32.mrf.mxu1  ;;  %4025 = vmatpush2.bf16.msra.mxu0 %v6263_v34  ;;  %v3716_v24 = vpop.f32.mrf.mxu0  ;;  %4051 = vmatprep.subr.bf16.mxu1 %v6268_v36  ;;  %v6315_v33 = vld [vmem:[%s8069_s5 + $0x4e8] ss:$28 sps:$4 sm:$0xff]   ;;  %v6316_v34 = vld [vmem:[%s8069_s5 + $0x2f0] ss:$28 sps:$4 sm:$0xff]  }
 0x37d   :  { %v7752_v25 = vadd.f32 %v3755_v38, %v3715_v41  ;;  %v3717_v51 = vadd.f32 %v3716_v24, %v7651_v47  ;;  %4026 = vmatprep.subr.bf16.mxu0 %v6271_v37  ;;  %v6275_v47 = vld [vmem:[%s8069_s5 + $0x9e8] ss:$28 sps:$4 sm:$0xff]   ;;  %v6318_v36 = vld [vmem:[%s8069_s5 + $0x670] ss:$28 sps:$4 sm:$0xff]   ;;  %v6322_v38 = vld [vmem:[%s8069_s5 + $0x638] ss:$28 sps:$4 sm:$0xff]  }
 0x37e   :  { %v3759_v52 = vpop.f32.mrf.mxu1  ;;  %v3718_v53 = vpop.f32.mrf.mxu0  ;;  %v6319_v37 = vld [vmem:[%s8069_s5 + $0x4b0] ss:$28 sps:$4 sm:$0xff]   ;;  %v6323_v41 = vld [vmem:[%s8069_s5 + $0x478] ss:$28 sps:$4 sm:$0xff]   ;;  %v6325_v24 = vld [vmem:[%s8069_s5 + $0xc0] ss:$28 sps:$4 sm:$0xff]  }
 0x37f   :  { %v7758_v54 = vadd.f32 %v3757_v44, %v3717_v51  ;;  %4052 = vmatpush1.bf16.msra.mxu1 %v6266_v43  ;;  %v6324_v43 = vld [vmem:[%s8069_s5 + $0x280] ss:$28 sps:$4 sm:$0xff]   ;;  %v6330_v51 = vld [vmem:[%s8069_s5 + $0x5c8] ss:$28 sps:$4 sm:$0xff]   ;;  %v6332_v53 = vld [vmem:[%s8069_s5 + $0x210] ss:$28 sps:$4 sm:$0xff]  }
 0x380   :  { %v3760_v56 = vpop.f32.mrf.mxu1  ;;  %4027 = vmatpush2.bf16.msra.mxu0 %v6269_v46  ;;  %v3719_v57 = vpop.f32.mrf.mxu0  ;;  %4053 = vmatprep.subr.bf16.mxu1 %v6274_v50  ;;  %v6326_v44 = vld [vmem:[%s8069_s5 + $0x600] ss:$28 sps:$4 sm:$0xff]   ;;  %v6328_v50 = vld [vmem:[%s8069_s5 + $0x248] ss:$28 sps:$4 sm:$0xff]  }
 0x381   :  { %4028 = vmatprep.subr.bf16.mxu0 %v6277_v39  ;;  %v6327_v46 = vld [vmem:[%s8069_s5 + $0x440] ss:$28 sps:$4 sm:$0xff]   ;;  %v6329_v39 = vld [vmem:[%s8069_s5 + $0x88] ss:$28 sps:$4 sm:$0xff]   ;;  %v6333_v56 = vld [vmem:[%s8069_s5 + $0x50] ss:$28 sps:$4 sm:$0xff]  }
 0x382   :  { %v6331_v52 = vld [vmem:[%s8069_s5 + $0x408] ss:$28 sps:$4 sm:$0xff]   ;;  %v6335_v57 = vld [vmem:[%s8069_s5 + $0x3d0] ss:$28 sps:$4 sm:$0xff]  }
 0x383   :  { %4054 = vmatpush1.bf16.msra.mxu1 %v6272_v55  ;;  %v6334_v55 = vld [vmem:[%s8069_s5 + $0x590] ss:$28 sps:$4 sm:$0xff]  }
 0x384   :  { %4029 = vmatpush2.bf16.msra.mxu0 %v6275_v47  ;;  %4055 = vmatprep.subr.bf16.mxu1 %v6280_v59  ;;  %v6336_v47 = vld [vmem:[%s8069_s5 + $0x1d8] ss:$28 sps:$4 sm:$0xff]  }
 0x385   :  { %4030 = vmatprep.subr.bf16.mxu0 %v6283_v61  ;;  %v6338_v59 = vld [vmem:[%s8069_s5 + $0x558] ss:$28 sps:$4 sm:$0xff]  }
 0x386   :  { %v6337_v61 = vld [vmem:[%s8069_s5 + $0x18] ss:$28 sps:$4 sm:$0xff]  }
 0x387   :  { %4056 = vmatpush1.bf16.msra.mxu1 %v6278_v62  ;;  %v6339_v62 = vld [vmem:[%s8069_s5 + $0x398] ss:$28 sps:$4 sm:$0xff]  }
 0x388   :  { %4031 = vmatpush2.bf16.msra.mxu0 %v6281_v30  ;;  %4057 = vmatprep.subr.bf16.mxu1 %v6286_v63  ;;  %v6340_v30 = vld [vmem:[%s8069_s5 + $0xa60] ss:$28 sps:$4 sm:$0xff]  }
 0x389   :  { %4032 = vmatprep.subr.bf16.mxu0 %v6289_v1  ;;  %v6341_v63 = vld [vmem:[%s8069_s5 + $0x8a0] ss:$28 sps:$4 sm:$0xff]  }
 0x38a   :  { %v6342_v1 = vld [vmem:[%s8069_s5 + $0xc20] ss:$28 sps:$4 sm:$0xff]  }
 0x38b   :  { %4058 = vmatpush1.bf16.msra.mxu1 %v6284_v2  ;;  %v6343_v2 = vld [vmem:[%s8069_s5 + $0xa28] ss:$28 sps:$4 sm:$0xff]  }
 0x38c   :  { %4033 = vmatpush2.bf16.msra.mxu0 %v6287_v3  ;;  %4059 = vmatprep.subr.bf16.mxu1 %v6292_v4 }
 0x38d   :  { %4034 = vmatprep.subr.bf16.mxu0 %v6295_v5  ;;  %v6344_v5 = vld [vmem:[%s8069_s5 + $0x868] ss:$28 sps:$4 sm:$0xff]  }
 0x38f   :  { %4060 = vmatpush1.bf16.msra.mxu1 %v6290_v6 }
 0x390   :  { %4035 = vmatpush2.bf16.msra.mxu0 %v6293_v9  ;;  %4061 = vmatprep.subr.bf16.mxu1 %v6298_v10  ;;  %v6345_v9 = vld [vmem:[%s8069_s5 + $0xbe8] ss:$28 sps:$4 sm:$0xff]  }
 0x391   :  { %4036 = vmatprep.subr.bf16.mxu0 %v6301_v11  ;;  %v6347_v11 = vld [vmem:[%s8069_s5 + $0x830] ss:$28 sps:$4 sm:$0xff]  }
 0x393   :  { %4062 = vmatpush1.bf16.msra.mxu1 %v6296_v12 }
 0x394   :  { %4037 = vmatpush2.bf16.msra.mxu0 %v6299_v0  ;;  %4063 = vmatprep.subr.bf16.mxu1 %v6304_v14  ;;  %v6348_v0 = vld [vmem:[%s8069_s5 + $0xbb0] ss:$28 sps:$4 sm:$0xff]   ;;  %v6349_v14 = vld [vmem:[%s8069_s5 + $0x9b8] ss:$28 sps:$4 sm:$0xff]  }
 0x395   :  { %4038 = vmatprep.subr.bf16.mxu0 %v6307_v17 }
 0x397   :  { %4064 = vmatpush1.bf16.msra.mxu1 %v6302_v18  ;;  %v6350_v18 = vld [vmem:[%s8069_s5 + $0x7f8] ss:$28 sps:$4 sm:$0xff]  }
 0x398   :  { %4039 = vmatpush2.bf16.msra.mxu0 %v6305_v19  ;;  %5451 = vmatprep.subr.bf16.mxu1 %v6308_v20  ;;  %v6351_v19 = vld [vmem:[%s8069_s5 + $0xb78] ss:$28 sps:$4 sm:$0xff]   ;;  %v6352_v20 = vld [vmem:[%s8069_s5 + $0x980] ss:$28 sps:$4 sm:$0xff]  }
 0x399   :  { %5473 = vmatprep.subr.bf16.mxu0 %v6310_v21  ;;  %v6353_v21 = vld [vmem:[%s8069_s5 + $0x7c0] ss:$28 sps:$4 sm:$0xff]  }
 0x39a   :  { %4082 = vmatmul.mubr.bf16.vlgmr.msra.gmra.mxu1 %v7118_v8 }
 0x39b   :  { %4041 = vmatmul.mubr.bf16.vlgmr.msra.gmra.mxu0 %v7116_v7  ;;  %5452 = vmatpush3.bf16.msra.mxu1 %v6309_v28  ;;  %v6354_v28 = vld [vmem:[%s8069_s5 + $0xb40] ss:$28 sps:$4 sm:$0xff]  }
 0x39c   :  { %4122 = vmatprep.mubr.bf16.mxu1 %v6936_v32  ;;  %5474 = vmatpush3.bf16.msra.mxu0 %v6311_v49  ;;  %v6317_v32 = vld [vmem:[%s8069_s5 + $0x130] ss:$28 sps:$4 sm:$0xff]   ;;  %v6355_v49 = vld [vmem:[%s8069_s5 + $0x948] ss:$28 sps:$4 sm:$0xff]  }
 0x39d   :  { %4162 = vmatprep.mubr.bf16.mxu0 %v7001_v13  ;;  %5453 = vmatprep.subr.bf16.mxu1 %v6312_v23  ;;  %v6320_v13 = vld [vmem:[%s8069_s5 + $0x2b8] ss:$28 sps:$4 sm:$0xff]   ;;  %v6356_v23 = vld [vmem:[%s8069_s5 + $0x788] ss:$28 sps:$4 sm:$0xff]  }
 0x39e   :  { %5475 = vmatprep.subr.bf16.mxu0 %v6314_v29  ;;  %v6357_v29 = vld [vmem:[%s8069_s5 + $0xb08] ss:$28 sps:$4 sm:$0xff]  }
 0x39f   :  { %5454 = vmatpush3.bf16.msra.mxu1 %v6313_v31  ;;  %v6358_v31 = vld [vmem:[%s8069_s5 + $0x910] ss:$28 sps:$4 sm:$0xff]  }
 0x3a0   :  { %5476 = vmatpush3.bf16.msra.mxu0 %v6315_v33  ;;  %5455 = vmatprep.subr.bf16.mxu1 %v6316_v34  ;;  %v6359_v33 = vld [vmem:[%s8069_s5 + $0x750] ss:$28 sps:$4 sm:$0xff]  }
 0x3a1   :  { %5477 = vmatprep.subr.bf16.mxu0 %v6318_v36  ;;  %v6360_v34 = vld [vmem:[%s8069_s5 + $0xad0] ss:$28 sps:$4 sm:$0xff]   ;;  %v6361_v36 = vld [vmem:[%s8069_s5 + $0x8d8] ss:$28 sps:$4 sm:$0xff]  }
 0x3a3   :  { %5456 = vmatpush3.bf16.msra.mxu1 %v6317_v32  ;;  %v6362_v32 = vld [vmem:[%s8069_s5 + $0x718] ss:$28 sps:$4 sm:$0xff]  }
 0x3a4   :  { %5478 = vmatpush3.bf16.msra.mxu0 %v6319_v37  ;;  %5457 = vmatprep.subr.bf16.mxu1 %v6320_v13  ;;  %v6363_v37 = vld [vmem:[%s8069_s5 + $0xa98] ss:$28 sps:$4 sm:$0xff]  }
 0x3a5   :  { %5479 = vmatprep.subr.bf16.mxu0 %v6322_v38  ;;  %v6364_v13 = vld [vmem:[#allocation4 + $0x78] sm:$0xff]  }
 0x3a6   :  { %v6371_v38 = vld [vmem:[#allocation4 + $0xf8] sm:$0xff]  }
 0x3a7   :  { %5458 = vmatpush3.bf16.msra.mxu1 %v6321_v15  ;;  %v4251_v15 = vmax.f32 %v7758_v54, 0.0  ;;  %v6368_v54 = vld [vmem:[#allocation4 + $0x68] sm:$0xff]  }
 0x3a8   :  { %5480 = vmatpush3.bf16.msra.mxu0 %v6323_v41  ;;  %5459 = vmatprep.subr.bf16.mxu1 %v6324_v43  ;;  %v6365_v41 = vld [vmem:[#allocation4 + $0x38] sm:$0xff]   ;;  %v6366_v43 = vld [vmem:[#allocation4 + $0x70] sm:$0xff]  }
 0x3a9   :  { %5481 = vmatprep.subr.bf16.mxu0 %v6326_v44  ;;  %v6373_v44 = vld [vmem:[#allocation4 + $0xb8] sm:$0xff]  }
 0x3ab   :  { %5460 = vmatpush3.bf16.msra.mxu1 %v6325_v24  ;;  %v4258_v24 = vpack.c.bf16 %v4251_v15, %v4251_v15 }
 0x3ac   :  { %5482 = vmatpush3.bf16.msra.mxu0 %v6327_v46  ;;  %5461 = vmatprep.subr.bf16.mxu1 %v6328_v50  ;;  %v6375_v46 = vld [vmem:[#allocation4 + $0xf0] sm:$0xff]  }
 0x3ad   :  { %5483 = vmatprep.subr.bf16.mxu0 %v6330_v51  ;;  %v6367_v51 = vld [vmem:[#allocation4 + $0x30] sm:$0xff]  }
 0x3af   :  { %5462 = vmatpush3.bf16.msra.mxu1 %v6329_v39 }
 0x3b0   :  { %5484 = vmatpush3.bf16.msra.mxu0 %v6331_v52  ;;  %5463 = vmatprep.subr.bf16.mxu1 %v6332_v53  ;;  %v6377_v52 = vld [vmem:[#allocation4 + $0xb0] sm:$0xff]   ;;  %v6379_v53 = vld [vmem:[#allocation4 + $0xe8] sm:$0xff]  }
 0x3b1   :  { %5485 = vmatprep.subr.bf16.mxu0 %v6334_v55 }
 0x3b3   :  { %5464 = vmatpush3.bf16.msra.mxu1 %v6333_v56  ;;  %v6369_v56 = vld [vmem:[#allocation4 + $0x28] sm:$0xff]  }
 0x3b4   :  { %5486 = vmatpush3.bf16.msra.mxu0 %v6335_v57  ;;  %5465 = vmatprep.subr.bf16.mxu1 %v6336_v47  ;;  %v6381_v47 = vld [vmem:[#allocation4 + $0xa8] sm:$0xff]  }
 0x3b5   :  { %5487 = vmatprep.subr.bf16.mxu0 %v6338_v59  ;;  %v6372_v59 = vld [vmem:[#allocation4 + $0x20] sm:$0xff]  }
 0x3b7   :  { %5466 = vmatpush3.bf16.msra.mxu1 %v6337_v61  ;;  %v6374_v61 = vld [vmem:[#allocation4 + $0x58] sm:$0xff]  }
 0x3b8   :  { %5488 = vmatpush3.bf16.msra.mxu0 %v6339_v62  ;;  %5495 = vmatprep.subr.bf16.mxu1 %v6340_v30  ;;  %v6385_v62 = vld [vmem:[#allocation4 + $0xa0] sm:$0xff]   ;;  %v6387_v30 = vld [vmem:[#allocation4 + $0xd8] sm:$0xff]  }
 0x3b9   :  { %5657 = vmatprep.subr.bf16.mxu0 %v6471_v27 }
 0x3ba   :  { %v7939_v3 = vpop.f32.mrf.mxu1  ;;  %4123 = vmatmul.mubr.bf16.vlgmr.msra.gmra.mxu1 %v6941_v45  ;;  %v6346_v45 = vld [vmem:[%s8069_s5 + $0x9f0] ss:$28 sps:$4 sm:$0xff]  }
 0x3bb   :  { %v7942_v4 = vpop.f32.mrf.mxu0  ;;  %4163 = vmatmul.mubr.bf16.vlgmr.msra.gmra.mxu0 %v7009_v16  ;;  %5496 = vmatpush3.bf16.msra.mxu1 %v6341_v63  ;;  %v6376_v63 = vld [vmem:[#allocation4 + $0x18] sm:$0xff]  }
 0x3bc   :  { %4202 = vmatprep.mubr.bf16.mxu1 %v6946_v48  ;;  %v7949_v6 = vpop.f32.mrf.mxu1  ;;  %5658 = vmatpush3.bf16.msra.mxu0 %v6342_v1  ;;  %v6378_v1 = vld [vmem:[#allocation4 + $0x50] sm:$0xff]  }
 0x3bd   :  { %v7957_v10 = vpop.f32.mrf.mxu0  ;;  %5497 = vmatprep.subr.bf16.mxu1 %v6343_v2  ;;  %5659 = vmatprep.subr.bf16.mxu0 %v6471_v27  ;;  %v6389_v2 = vld [vmem:[#allocation4 + $0x98] sm:$0xff]  }
 0x3be   :  { %v3800_v16 = vpop.f32.mrf.mxu1  ;;  %5673 = vmatprep.mubr.msk.bf16.mxu0 %vm6472_vm2, %v6471_v27 }
 0x3bf   :  { %v3841_v48 = vpop.f32.mrf.mxu0  ;;  %5498 = vmatpush3.bf16.msra.mxu1 %v6344_v5  ;;  %v6390_v5 = vld [vmem:[#allocation4 + $0xd0] sm:$0xff]  }
 0x3c0   :  { %v3801_v12 = vpop.f32.mrf.mxu1  ;;  %5660 = vmatpush3.bf16.msra.mxu0 %v6345_v9  ;;  %5499 = vmatprep.subr.bf16.mxu1 %v6346_v45  ;;  %v6380_v9 = vld [vmem:[#allocation4 + $0x10] sm:$0xff]   ;;  %v6382_v45 = vld [vmem:[#allocation4 + $0x48] sm:$0xff]  }
 0x3c1   :  { %v3842_v17 = vpop.f32.mrf.mxu0  ;;  %5661 = vmatprep.subr.bf16.mxu0 %v6471_v27  ;;  %v6391_v16 = vld [vmem:[#allocation4 + $0x90] sm:$0xff]   ;;  %v6392_v48 = vld [vmem:[#allocation4 + $0xc8] sm:$0xff]   ;;  %v6386_v12 = vld [vmem:[#allocation4 + $0x40] sm:$0xff]  }
 0x3c2   :  { %v6394_v17 = vld [vmem:[#allocation4 + $0xc0] sm:$0xff]  }
 0x3c3   :  { %5500 = vmatpush3.bf16.msra.mxu1 %v6347_v11  ;;  %v6384_v11 = vld [vmem:[#allocation4 + $0x8] sm:$0xff]  }
 0x3c4   :  { %5662 = vmatpush3.bf16.msra.mxu0 %v6348_v0  ;;  %5501 = vmatprep.subr.bf16.mxu1 %v6349_v14  ;;  %v1558_v0 = vrot.slane %v7604_v35, %v607_v58  ;;  %v6393_v14 = vld [vmem:[#allocation4 + $0x88] sm:$0xff]  }
 0x3c5   :  { %5663 = vmatprep.subr.bf16.mxu0 %v6471_v27 }
 0x3c7   :  { %5502 = vmatpush3.bf16.msra.mxu1 %v6350_v18  ;;  %v1562_v18 = vrot.slane %v7604_v35, %v611_v60 }
 0x3c8   :  { %5664 = vmatpush3.bf16.msra.mxu0 %v6351_v19  ;;  %5503 = vmatprep.subr.bf16.mxu1 %v6352_v20  ;;  %v6388_v19 = vld [vmem:[#allocation4] sm:$0xff]   ;;  %v4250_v20 = vmax.f32 %v7752_v25, 0.0 }
 0x3c9   :  { %5665 = vmatprep.subr.bf16.mxu0 %v6471_v27  ;;  %v3799_v58 = vadd.f32 %v7949_v6, %v1562_v18  ;;  %v6400_v6 = vld [vmem:[#allocation4 + $0x168] sm:$0xff]  }
 0x3cb   :  { %5504 = vmatpush3.bf16.msra.mxu1 %v6353_v21  ;;  %v6396_v21 = vld [vmem:[#allocation4 + $0x178] sm:$0xff]   ;;  %v3840_v25 = vadd.f32 %v7957_v10, %v3799_v58 }
 0x3cc   :  { %5666 = vmatpush3.bf16.msra.mxu0 %v6354_v28  ;;  %5505 = vmatprep.subr.bf16.mxu1 %v6355_v49  ;;  %v3797_v28 = vadd.f32 %v7939_v3, %v1558_v0  ;;  %v6395_v49 = vld [vmem:[#allocation4 + $0x80] sm:$0xff]  }
 0x3cd   :  { %5667 = vmatprep.subr.bf16.mxu0 %v6471_v27 }
 0x3ce   :  { %v3838_v60 = vadd.f32 %v7942_v4, %v3797_v28  ;;  %v6401_v4 = vld [vmem:[#allocation4 + $0x128] sm:$0xff]  }
 0x3cf   :  { %5506 = vmatpush3.bf16.msra.mxu1 %v6356_v23  ;;  %v6397_v23 = vld [vmem:[#allocation4 + $0x138] sm:$0xff]  }
 0x3d0   :  { %5668 = vmatpush3.bf16.msra.mxu0 %v6357_v29  ;;  %5507 = vmatprep.subr.bf16.mxu1 %v6358_v31  ;;  %v4257_v29 = vpack.c.bf16 %v4250_v20, %v4250_v20  ;;  %v6398_v31 = vld [vmem:[#allocation4 + $0x170] sm:$0xff]  }
 0x3d1   :  { %5669 = vmatprep.subr.bf16.mxu0 %v6471_v27 }
 0x3d3   :  { %5508 = vmatpush3.bf16.msra.mxu1 %v6359_v33 }
 0x3d4   :  { %5670 = vmatpush3.bf16.msra.mxu0 %v6360_v34  ;;  %5509 = vmatprep.subr.bf16.mxu1 %v6361_v36  ;;  %v6399_v34 = vld [vmem:[#allocation4 + $0x130] sm:$0xff]  }
 0x3d5   :  { %5671 = vmatprep.subr.bf16.mxu0 %v6471_v27 }
 0x3d7   :  { %5510 = vmatpush3.bf16.msra.mxu1 %v6362_v32 }
 0x3d8   :  { %5672 = vmatpush3.bf16.msra.mxu0 %v6363_v37  ;;  %5526 = vmatprep.subr.bf16.mxu1 %v6364_v13 }
 0x3d9   :  { %5548 = vmatprep.subr.bf16.mxu0 %v6371_v38 }
 0x3da   :  { %4203 = vmatmul.mubr.bf16.vlgmr.msra.gmra.mxu1 %v7116_v7  ;;  %v6370_v7 = vld [vmem:[#allocation4 + $0x60] sm:$0xff]  }
 0x3db   :  { %v8021_v50 = vpop.f32.mrf.mxu0  ;;  %5674 = vmatmul.mubr.bf16.vlgmr.msra.gmra.mxu0 %v7118_v8  ;;  %5527 = vmatpush3.bf16.msra.mxu1 %v6365_v41  ;;  %v6383_v8 = vld [vmem:[#allocation4 + $0xe0] sm:$0xff]  }
 0x3dc   :  { %4751 = vmatprep.mubr.bf16.mxu1 %v4258_v24  ;;  %5528 = vmatprep.subr.bf16.mxu1 %v6366_v43  ;;  %v6402_v43 = vld [vmem:[#allocation4 + $0x160] sm:$0xff]  }
 0x3dd   :  { %v8024_v39 = vpop.f32.mrf.mxu0  ;;  %5549 = vmatpush3.bf16.msra.mxu0 %v6373_v44  ;;  %v6403_v24 = vld [vmem:[#allocation4 + $0x120] sm:$0xff]  }
 0x3de   :  { %5550 = vmatprep.subr.bf16.mxu0 %v6375_v46  ;;  %v6412_v46 = vld [vmem:[#allocation4 + $0x1b8] sm:$0xff]  }
 0x3df   :  { %v3923_v55 = vpop.f32.mrf.mxu0  ;;  %5529 = vmatpush3.bf16.msra.mxu1 %v6367_v51 }
 0x3e0   :  { %5530 = vmatprep.subr.bf16.mxu1 %v6368_v54  ;;  %v6404_v54 = vld [vmem:[#allocation4 + $0x158] sm:$0xff]   ;;  %v6414_v55 = vld [vmem:[#allocation4 + $0x1a8] sm:$0xff]  }
 0x3e1   :  { %v3924_v57 = vpop.f32.mrf.mxu0  ;;  %5551 = vmatpush3.bf16.msra.mxu0 %v6377_v52  ;;  %v6406_v52 = vld [vmem:[#allocation4 + $0x150] sm:$0xff]  }
 0x3e2   :  { %5552 = vmatprep.subr.bf16.mxu0 %v6379_v53  ;;  %v6407_v53 = vld [vmem:[#allocation4 + $0x110] sm:$0xff]   ;;  %v6415_v57 = vld [vmem:[#allocation4 + $0x1a0] sm:$0xff]  }
 0x3e3   :  { %5531 = vmatpush3.bf16.msra.mxu1 %v6369_v56  ;;  %v6408_v56 = vld [vmem:[#allocation4 + $0x148] sm:$0xff]  }
 0x3e4   :  { %5532 = vmatprep.subr.bf16.mxu1 %v6370_v7  ;;  %v6409_v7 = vld [vmem:[#allocation4 + $0x108] sm:$0xff]  }
 0x3e5   :  { %5553 = vmatpush3.bf16.msra.mxu0 %v6381_v47  ;;  %v6410_v47 = vld [vmem:[#allocation4 + $0x140] sm:$0xff]  }
 0x3e6   :  { %5554 = vmatprep.subr.bf16.mxu0 %v6383_v8  ;;  %v6411_v8 = vld [vmem:[#allocation4 + $0x100] sm:$0xff]  }
 0x3e7   :  { %5533 = vmatpush3.bf16.msra.mxu1 %v6372_v59  ;;  %v6416_v59 = vld [vmem:[#allocation4 + $0x198] sm:$0xff]  }
 0x3e8   :  { %5534 = vmatprep.subr.bf16.mxu1 %v6374_v61 }
 0x3e9   :  { %5555 = vmatpush3.bf16.msra.mxu0 %v6385_v62  ;;  %v6417_v62 = vld [vmem:[#allocation4 + $0x190] sm:$0xff]  }
 0x3ea   :  { %5556 = vmatprep.subr.bf16.mxu0 %v6387_v30 }
 0x3eb   :  { %5535 = vmatpush3.bf16.msra.mxu1 %v6376_v63 }
 0x3ec   :  { %5536 = vmatprep.subr.bf16.mxu1 %v6378_v1  ;;  %v6418_v1 = vld [vmem:[#allocation4 + $0x188] sm:$0xff]  }
 0x3ed   :  { %5557 = vmatpush3.bf16.msra.mxu0 %v6389_v2 }
 0x3ee   :  { %5558 = vmatprep.subr.bf16.mxu0 %v6390_v5  ;;  %v6419_v5 = vld [vmem:[#allocation4 + $0x180] sm:$0xff]  }
 0x3ef   :  { %5537 = vmatpush3.bf16.msra.mxu1 %v6380_v9 }
 0x3f0   :  { %5538 = vmatprep.subr.bf16.mxu1 %v6382_v45 }
 0x3f1   :  { %5559 = vmatpush3.bf16.msra.mxu0 %v6391_v16 }
 0x3f2   :  { %5560 = vmatprep.subr.bf16.mxu0 %v6392_v48 }
 0x3f3   :  { %5539 = vmatpush3.bf16.msra.mxu1 %v6384_v11  ;;  %v1566_v11 = vrot.slane %v7604_v35, %v615_v40 }
 0x3f4   :  { %5540 = vmatprep.subr.bf16.mxu1 %v6386_v12  ;;  %v1570_v12 = vrot.slane %v7604_v35, %v619_v26 }
 0x3f5   :  { %5561 = vmatpush3.bf16.msra.mxu0 %v6393_v14 }
 0x3f6   :  { %5562 = vmatprep.subr.bf16.mxu0 %v6394_v17 }
 0x3f7   :  { %5541 = vmatpush3.bf16.msra.mxu1 %v6388_v19 }
 0x3f8   :  { %5570 = vmatprep.subr.bf16.mxu1 %v6396_v21 }
 0x3f9   :  { %5563 = vmatpush3.bf16.msra.mxu0 %v6395_v49 }
 0x3fa   :  { %v3878_v33 = vpop.f32.mrf.mxu1  ;;  %4752 = vmatmul.mubr.bf16.vlgmr.msra.gmra.mxu1 %v4257_v29  ;;  %5677 = vmatprep.subr.bf16.mxu0 %v6471_v27 }
 0x3fb   :  { %v3879_v3 = vadd.f32 %v3878_v33, %v3838_v60  ;;  %5571 = vmatpush3.bf16.msra.mxu1 %v6397_v23 }
 0x3fc   :  { %v3880_v36 = vpop.f32.mrf.mxu1  ;;  %5572 = vmatprep.subr.bf16.mxu1 %v6398_v31 }
 0x3fd   :  { %v3920_v32 = vadd.f32 %v8021_v50, %v3879_v3  ;;  %v3881_v37 = vadd.f32 %v3880_v36, %v3840_v25  ;;  %v6405_v50 = vld [vmem:[#allocation4 + $0x118] sm:$0xff]  }
 0x3fe   :  { %v3882_v13 = vpop.f32.mrf.mxu1 }
 0x3ff   :  { %v3922_v38 = vadd.f32 %v8024_v39, %v3881_v37  ;;  %5573 = vmatpush3.bf16.msra.mxu1 %v6399_v34  ;;  %v4252_v15 = vmax.f32 %v3920_v32, 0.0  ;;  %v6413_v39 = vld [vmem:[#allocation4 + $0x1b0] sm:$0xff]  }
 0x400   :  { %v3883_v41 = vpop.f32.mrf.mxu1  ;;  %5574 = vmatprep.subr.bf16.mxu1 %v6400_v6 }
 0x401   :  { %v4253_v44 = vmax.f32 %v3922_v38, 0.0  ;;  %v4259_v51 = vpack.c.bf16 %v4252_v15, %v4252_v15  ;;  %v1574_v15 = vrot.slane %v7604_v35, %v623_v42 }
 0x403   :  { %v4260_v10 = vpack.c.bf16 %v4253_v44, %v4253_v44  ;;  %5575 = vmatpush3.bf16.msra.mxu1 %v6401_v4 }
 0x404   :  { %5576 = vmatprep.subr.bf16.mxu1 %v6402_v43 }
 0x405   :  { %4791 = vmatprep.mubr.bf16.mxu0 %v4260_v10 }
 0x406   :  { %4792 = vmatmul.mubr.bf16.vlgmr.msra.gmra.mxu0 %v4259_v51 }
 0x407   :  { %5577 = vmatpush3.bf16.msra.mxu1 %v6403_v24  ;;  %5678 = vmatpush3.bf16.msra.mxu0 %v6412_v46 }
 0x408   :  { %5578 = vmatprep.subr.bf16.mxu1 %v6404_v54  ;;  %5679 = vmatprep.subr.bf16.mxu0 %v6471_v27 }
 0x409   :  { %5693 = vmatprep.mubr.msk.bf16.mxu0 %vm6472_vm2, %v6471_v27 }
 0x40b   :  { %5579 = vmatpush3.bf16.msra.mxu1 %v6405_v50  ;;  %5680 = vmatpush3.bf16.msra.mxu0 %v6413_v39 }
 0x40c   :  { %5580 = vmatprep.subr.bf16.mxu1 %v6406_v52  ;;  %5681 = vmatprep.subr.bf16.mxu0 %v6471_v27 }
 0x40f   :  { %5581 = vmatpush3.bf16.msra.mxu1 %v6407_v53  ;;  %5682 = vmatpush3.bf16.msra.mxu0 %v6414_v55 }
 0x410   :  { %5582 = vmatprep.subr.bf16.mxu1 %v6408_v56  ;;  %5683 = vmatprep.subr.bf16.mxu0 %v6471_v27 }
 0x413   :  { %5583 = vmatpush3.bf16.msra.mxu1 %v6409_v7  ;;  %5684 = vmatpush3.bf16.msra.mxu0 %v6415_v57 }
 0x414   :  { %5584 = vmatprep.subr.bf16.mxu1 %v6410_v47  ;;  %5685 = vmatprep.subr.bf16.mxu0 %v6471_v27 }
 0x417   :  { %5585 = vmatpush3.bf16.msra.mxu1 %v6411_v8  ;;  %5686 = vmatpush3.bf16.msra.mxu0 %v6416_v59 }
 0x418   :  { %5687 = vmatprep.subr.bf16.mxu0 %v6471_v27 }
 0x41b   :  { %v3960_v61 = vpop.f32.mrf.mxu0  ;;  %5688 = vmatpush3.bf16.msra.mxu0 %v6417_v62 }
 0x41c   :  { %5689 = vmatprep.subr.bf16.mxu0 %v6471_v27  ;;  %v3961_v0 = vadd.f32 %v3960_v61, %v1566_v11  ;;  %v5367_v61 = vld [vmem:[%s8072_s8] ss:$0 sm:$0xff] }
 0x41d   :  { %v3962_v30 = vpop.f32.mrf.mxu0 }
 0x41e   :  { %v3963_v14 = vadd.f32 %v3962_v30, %v1570_v12 }
 0x41f   :  { %v3964_v63 = vpop.f32.mrf.mxu0  ;;  %5690 = vmatpush3.bf16.msra.mxu0 %v6418_v1 }
 0x420   :  { %5691 = vmatprep.subr.bf16.mxu0 %v6471_v27 }
 0x421   :  { %v3965_v2 = vpop.f32.mrf.mxu0 }
 0x423   :  { %5692 = vmatpush3.bf16.msra.mxu0 %v6419_v5 }
 0x43a   :  { %v4001_v9 = vpop.f32.mrf.mxu1 }
 0x43b   :  { %v4002_v17 = vadd.f32 %v4001_v9, %v3961_v0 }
 0x43c   :  { %v4003_v45 = vpop.f32.mrf.mxu1 }
 0x43d   :  { %v4004_v27 = vadd.f32 %v4003_v45, %v3963_v14 }
 0x43e   :  { %v4005_v16 = vpop.f32.mrf.mxu1 }
 0x440   :  { %v4006_v48 = vpop.f32.mrf.mxu1 }
 0x45a   :  { %v4083_v18 = vpop.f32.mrf.mxu1 }
 0x45b   :  { %v4042_v19 = vpop.f32.mrf.mxu0 }
 0x45c   :  { %v4043_v20 = vadd.f32 %v4042_v19, %v4002_v17  ;;  %v4085_v21 = vpop.f32.mrf.mxu1 }
 0x45d   :  { %v4044_v28 = vpop.f32.mrf.mxu0 }
 0x45e   :  { %v4084_v49 = vadd.f32 %v4083_v18, %v4043_v20  ;;  %v4045_v58 = vadd.f32 %v4044_v28, %v4004_v27  ;;  %v4087_v23 = vpop.f32.mrf.mxu1 }
 0x45f   :  { %v4046_v29 = vpop.f32.mrf.mxu0 }
 0x460   :  { %v4086_v31 = vadd.f32 %v4085_v21, %v4045_v58  ;;  %v4088_v60 = vpop.f32.mrf.mxu1  ;;  %v4254_v40 = vmax.f32 %v4084_v49, 0.0 }
 0x461   :  { %v4047_v33 = vpop.f32.mrf.mxu0 }
 0x462   :  { %v4255_v25 = vmax.f32 %v4086_v31, 0.0  ;;  %v4261_v26 = vpack.c.bf16 %v4254_v40, %v4254_v40 }
 0x464   :  { %v4262_v3 = vpack.c.bf16 %v4255_v25, %v4255_v25 }
 0x466   :  { %4831 = vmatprep.mubr.bf16.mxu1 %v4262_v3 }
 0x467   :  { %4832 = vmatmul.mubr.bf16.vlgmr.msra.gmra.mxu1 %v4261_v26 }
 0x47a   :  { %v5467_v34 = vpop.f32.mrf.mxu1 }
 0x47b   :  { %v5489_v36 = vpop.f32.mrf.mxu0 }
 0x47c   :  { %v5468_v6 = vpop.f32.mrf.mxu1 }
 0x47d   :  { %v5490_v32 = vpop.f32.mrf.mxu0  ;;  %v5469_v41 = vadd.f32 %v5468_v6, %v5467_v34 }
 0x47e   :  { %v5470_v37 = vpop.f32.mrf.mxu1  ;;  %v5491_v44 = vadd.f32 %v5490_v32, %v5489_v36 }
 0x47f   :  { %v5492_v13 = vpop.f32.mrf.mxu0  ;;  %v4125_v43 = vadd.f32 %v5469_v41, %v1574_v15 }
 0x480   :  { %v5471_v38 = vpop.f32.mrf.mxu1 }
 0x481   :  { %v5493_v4 = vpop.f32.mrf.mxu0  ;;  %v4165_v51 = vadd.f32 %v5491_v44, %v4125_v43 }
 0x49a   :  { %v5511_v10 = vpop.f32.mrf.mxu1 }
 0x49b   :  { %v4244_v24 = vpop.f32.mrf.mxu0 }
 0x49c   :  { %v5512_v46 = vpop.f32.mrf.mxu1 }
 0x49d   :  { %v5513_v54 = vadd.f32 %v5512_v46, %v5511_v10  ;;  %v5675_v50 = vpop.f32.mrf.mxu0 }
 0x49e   :  { %v5514_v39 = vpop.f32.mrf.mxu1 }
 0x49f   :  { %v4205_v52 = vadd.f32 %v5513_v54, %v4165_v51  ;;  %v4247_v53 = vpop.f32.mrf.mxu0 }
 0x4a0   :  { %v5515_v55 = vpop.f32.mrf.mxu1 }
 0x4a1   :  { %v4245_v56 = vadd.f32 %v4244_v24, %v4205_v52  ;;  %v5676_v7 = vpop.f32.mrf.mxu0 }
 0x4a3   :  { %v4256_v57 = vmax.f32 %v4245_v56, 0.0 }
 0x4a5   :  { %v4263_v47 = vpack.c.bf16 %v4256_v57, %v4256_v57 }
 0x4a7   :  { %5694 = vmatmul.mubr.bf16.vlgmr.msra.gmra.mxu0 %v4263_v47 }
 0x4ba   :  { %v5542_v22 = vpop.f32.mrf.mxu1 }
 0x4bc   :  { %v5543_v42 = vpop.f32.mrf.mxu1 }
 0x4bd   :  { %v5544_v35 = vadd.f32 %v5543_v42, %v5542_v22 }
 0x4be   :  { %v5545_v8 = vpop.f32.mrf.mxu1 }
 0x4bf   :  { %v4754_v63 = vadd.f32 %v5544_v35, %v5367_v61 }
 0x4c0   :  { %v5546_v59 = vpop.f32.mrf.mxu1 }
 0x4c6   :  { %v5564_v62 = vpop.f32.mrf.mxu0 }
 0x4c8   :  { %v5565_v30 = vpop.f32.mrf.mxu0 }
 0x4c9   :  { %v5566_v1 = vadd.f32 %v5565_v30, %v5564_v62 }
 0x4ca   :  { %v5567_v2 = vpop.f32.mrf.mxu0 }
 0x4cb   :  { %v4794_v5 = vadd.f32 %v5566_v1, %v4754_v63 }
 0x4cc   :  { %v5568_v9 = vpop.f32.mrf.mxu0 }
 0x527   :  { %v5586_v45 = vpop.f32.mrf.mxu1 }
 0x529   :  { %v5587_v16 = vpop.f32.mrf.mxu1 }
 0x52a   :  { %v5588_v12 = vadd.f32 %v5587_v16, %v5586_v45 }
 0x52b   :  { %v5589_v48 = vpop.f32.mrf.mxu1 }
 0x52c   :  { %v4834_v0 = vadd.f32 %v5588_v12, %v4794_v5 }
 0x52d   :  { %v5590_v11 = vpop.f32.mrf.mxu1 }
 0x567   :  { %v4873_v14 = vpop.f32.mrf.mxu0 }
 0x568   :  { %v4874_v17 = vadd.f32 %v4873_v14, %v4834_v0 }
 0x569   :  { %v5695_v18 = vpop.f32.mrf.mxu0 }
 0x56a   :  { %4879 = vst [vmem:[%s8073_s9] sm:$0x3] %v4874_v17 }
 0x56b   :  { %v4876_v19 = vpop.f32.mrf.mxu0 }
 0x56d   :  { %v5696_v27 = vpop.f32.mrf.mxu0 }
 0x56e   :  { %4884 = vsyncpa [#allocation3], 1 }
 0x56f   :  { %4885 = vsyncpa [#allocation5], 1 }

</bundles_post_ra>
